<compile_context>
chip_gen: v7x
topology: tpu7x:2x2x1
jax: 0.10.0
libtpu: 0.0.40
codegen_flags: <defaults>
</compile_context>

<pallas_src>
import numpy as np
import jax
import jax.numpy as jnp
from jax.experimental import pallas as pl
from jax.experimental.pallas import tpu as pltpu


# --------------------------------------------------------------------------- #
# Host-side parameter preprocessing: conv -> dense, gate-padded matrices
# --------------------------------------------------------------------------- #
def _conv1xK_to_dense(weight_np, W, pad):
    """(Cout, Cin, 1, K) conv kernel -> dense (Cin*W, Cout*W) so that
    flatten(conv2d(x, weight, padding=(0, pad)))[co*W + w_out]
      == sum_row flatten(x)[row] * dense[row, co*W + w_out]."""
    Cout, Cin, _, K = weight_np.shape
    dense = np.zeros((Cin * W, Cout * W), np.float32)
    rows = np.arange(Cin) * W
    cols = np.arange(Cout) * W
    for k in range(K):
        off = k - pad
        for w_out in range(W):
            w_in = w_out + off
            if 0 <= w_in < W:
                dense[np.ix_(rows + w_in, cols + w_out)] += weight_np[:, :, 0, k].T
    return dense


def _pack_gate_cols(dense, hid, W, CHP):
    """Re-layout columns so gate g occupies cols [g*CHP, g*CHP + hid*W)."""
    CH = hid * W
    out = np.zeros((dense.shape[0], 4 * CHP), np.float32)
    for g in range(4):
        out[:, g * CHP:g * CHP + CH] = dense[:, g * CH:(g + 1) * CH]
    return out


def _pad_rows(mat, target_rows):
    out = np.zeros((target_rows, mat.shape[1]), np.float32)
    out[:mat.shape[0]] = mat
    return out


def init_params(key, *, input_dim, hidden_dim, input_width, output_width):
    W = input_width
    K = W
    pad = W // 2                      # conv kernel (1, W), padding (0, W//2)
    num_layers = len(hidden_dim)
    keys = jax.random.split(key, 2 * num_layers + 2)

    params = {"layers": []}
    chps = []
    for l in range(num_layers):
        cin = input_dim if l == 0 else hidden_dim[l - 1]
        hid = hidden_dim[l]
        CH = hid * W
        CHP = max(128, ((CH + 127) // 128) * 128)   # per-gate lane-padded width
        chps.append(CHP)

        fan_in = (cin + hid) * K
        bound = 1.0 / np.sqrt(fan_in)
        weight = jax.random.uniform(keys[2 * l], (4 * hid, cin + hid, 1, K),
                                    jnp.float32, -bound, bound)
        bias = jax.random.uniform(keys[2 * l + 1], (4 * hid,),
                                  jnp.float32, -bound, bound)
        wnp, bnp = np.asarray(weight), np.asarray(bias)

        dense = _conv1xK_to_dense(wnp, W, pad)          # ((cin+hid)*W, 4*hid*W)
        dense_x = dense[:cin * W]                       # rows for the x channels
        dense_h = dense[cin * W:]                       # rows for the h channels

        Wx = _pack_gate_cols(dense_x, hid, W, CHP)
        if l > 0:                                       # prev layer h is CHP-padded
            Wx = _pad_rows(Wx, chps[l - 1])
        Wh = _pad_rows(_pack_gate_cols(dense_h, hid, W, CHP), CHP)

        b_packed = np.zeros((1, 4 * CHP), np.float32)
        for g in range(4):
            b_packed[0, g * CHP:g * CHP + CH] = np.repeat(bnp[g * hid:(g + 1) * hid], W)

        params["layers"].append({
            "wx": jnp.asarray(Wx, jnp.bfloat16),
            "wh": jnp.asarray(Wh, jnp.bfloat16),
            "b": jnp.asarray(b_packed, jnp.float32),
        })

    # final Linear(hidden_dim[-1]*input_width, input_dim*output_width)
    Din = hidden_dim[-1] * W
    Dout = input_dim * output_width
    bound = 1.0 / np.sqrt(Din)
    wl = jax.random.uniform(keys[-2], (Dout, Din), jnp.float32, -bound, bound)
    bl = jax.random.uniform(keys[-1], (Dout,), jnp.float32, -bound, bound)
    wl_t = _pad_rows(np.asarray(wl).T, chps[-1])        # (CHP_last, Dout)
    params["w_lin"] = jnp.asarray(wl_t, jnp.bfloat16)
    params["b_lin"] = jnp.asarray(bl, jnp.float32).reshape(1, Dout)
    params["chps"] = chps
    return params


# --------------------------------------------------------------------------- #
# Fused forward kernel: all ConvLSTM layers + time loop + final Linear
# --------------------------------------------------------------------------- #
def _make_fused_kernel(num_layers, T, B, chps):
    n_in = 1 + 3 * num_layers + 2

    def kernel(*args):
        x_ref = args[0]                               # (T*B, Cin*W), time-major rows
        layer_refs = args[1:1 + 3 * num_layers]       # wx, wh, b per layer
        wl_ref = args[1 + 3 * num_layers]             # (CHP_last, Dout) bf16
        bl_ref = args[2 + 3 * num_layers]             # (1, Dout) f32
        out_ref = args[n_in]                          # (B, Dout)
        seq_refs = args[n_in + 1:]                    # VMEM scratch per non-final layer

        h = None
        for l in range(num_layers):
            wx_ref = layer_refs[3 * l]
            wh_ref = layer_refs[3 * l + 1]
            b_ref = layer_refs[3 * l + 2]
            CHP = chps[l]

            xin = x_ref[...] if l == 0 else seq_refs[l - 1][...]
            # Hoisted input projection: one matmul over all T*B rows.
            gi_all = jnp.dot(xin.astype(jnp.bfloat16), wx_ref[...],
                             preferred_element_type=jnp.float32) + b_ref[...]

            h = jnp.zeros((B, CHP), jnp.float32)
            c = jnp.zeros((B, CHP), jnp.float32)
            for t in range(T):                        # serial recurrence, unrolled
                gates = gi_all[t * B:(t + 1) * B] + jnp.dot(
                    h.astype(jnp.bfloat16), wh_ref[...],
                    preferred_element_type=jnp.float32)
                i_g = jax.nn.sigmoid(gates[:, 0 * CHP:1 * CHP])
                f_g = jax.nn.sigmoid(gates[:, 1 * CHP:2 * CHP])
                o_g = jax.nn.sigmoid(gates[:, 2 * CHP:3 * CHP])
                g_g = jnp.tanh(gates[:, 3 * CHP:4 * CHP])
                c = f_g * c + i_g * g_g
                h = o_g * jnp.tanh(c)
                if l < num_layers - 1:                # stage sequence for next layer
                    seq_refs[l][t * B:(t + 1) * B, :] = h

        # last_states[0][0] of the PyTorch module == last layer's final h
        out_ref[...] = (jnp.dot(h.astype(jnp.bfloat16), wl_ref[...],
                                preferred_element_type=jnp.float32)
                        + bl_ref[...]).astype(out_ref.dtype)

    return kernel


def convlstm_timeseries_forward(X, params, *, input_dim, hidden_dim,
                                input_width, output_width):
    # X: (B, T, C=input_dim, 1, W=input_width) float32
    B, T = X.shape[0], X.shape[1]
    W = input_width
    num_layers = len(hidden_dim)
    chps = params["chps"]
    Dout = input_dim * output_width

    # (B, T, C, 1, W) -> channel-major flatten -> time-major rows (T*B, C*W)
    x_flat = jnp.transpose(X.reshape(B, T, input_dim * W), (1, 0, 2))
    x_flat = x_flat.reshape(T * B, input_dim * W)

    flat_params = []
    for lp in params["layers"]:
        flat_params += [lp["wx"], lp["wh"], lp["b"]]

    kernel = _make_fused_kernel(num_layers, T, B, chps)
    out = pl.pallas_call(
        kernel,
        out_shape=jax.ShapeDtypeStruct((B, Dout), jnp.float32),
        scratch_shapes=[pltpu.VMEM((T * B, chps[l]), jnp.float32)
                        for l in range(num_layers - 1)],
    )(x_flat, *flat_params, params["w_lin"], params["b_lin"])
    return out
    # TODO(synk): stateful `hidden_state` input raises NotImplementedError in the
    # PyTorch reference too, so only the zero-init path is implemented here.


# --------------------------------------------------------------------------- #
if __name__ == "__main__":
    INPUT_DIM = 4
    HIDDEN_DIM = [16, 8]      # two stacked ConvLSTM layers
    INPUT_WIDTH = 5           # odd, so the (1, W) conv with W//2 padding is shape-preserving
    OUTPUT_WIDTH = 3
    T = 6
    B = 2

    key = jax.random.PRNGKey(0)
    kp, kx = jax.random.split(key)
    params = init_params(kp, input_dim=INPUT_DIM, hidden_dim=HIDDEN_DIM,
                         input_width=INPUT_WIDTH, output_width=OUTPUT_WIDTH)

    X = jax.random.normal(kx, (B, T, INPUT_DIM, 1, INPUT_WIDTH), jnp.float32)
    out = convlstm_timeseries_forward(X, params, input_dim=INPUT_DIM,
                                      hidden_dim=HIDDEN_DIM,
                                      input_width=INPUT_WIDTH,
                                      output_width=OUTPUT_WIDTH)
    out = jax.block_until_ready(out)
    assert out.shape == (B, INPUT_DIM * OUTPUT_WIDTH), out.shape
    print("KERNEL_OK")
</pallas_src>

<mosaic_0001>
module attributes {stable_mosaic.version = 11 : i64} {
  func.func @kernel(%arg0: memref<12x20xf32, #tpu.memory_space<vmem>>, %arg1: memref<20x512xbf16, #tpu.memory_space<vmem>>, %arg2: memref<128x512xbf16, #tpu.memory_space<vmem>>, %arg3: memref<1x512xf32, #tpu.memory_space<vmem>>, %arg4: memref<128x512xbf16, #tpu.memory_space<vmem>>, %arg5: memref<128x512xbf16, #tpu.memory_space<vmem>>, %arg6: memref<1x512xf32, #tpu.memory_space<vmem>>, %arg7: memref<128x12xbf16, #tpu.memory_space<vmem>>, %arg8: memref<1x12xf32, #tpu.memory_space<vmem>>, %arg9: memref<2x12xf32, #tpu.memory_space<vmem>>, %arg10: memref<12x128xf32, #tpu.memory_space<vmem>>) attributes {dimension_semantics = [], scalar_prefetch = 0 : i64, scratch_operands = 1 : i64, tpu.core_type = #tpu.core_type<tc>} {
    %c0 = arith.constant 0 : index
    %c0_0 = arith.constant 0 : index
    %0 = vector.load %arg0[%c0, %c0_0] : memref<12x20xf32, #tpu.memory_space<vmem>>, vector<12x20xf32>
    %1 = arith.truncf %0 : vector<12x20xf32> to vector<12x20xbf16>
    %c0_1 = arith.constant 0 : index
    %c0_2 = arith.constant 0 : index
    %2 = vector.load %arg1[%c0_1, %c0_2] : memref<20x512xbf16, #tpu.memory_space<vmem>>, vector<20x512xbf16>
    %cst = arith.constant dense<0.000000e+00> : vector<12x512xf32>
    %3 = tpu.matmul %1, %2, %cst {dimension_numbers = #tpu.dot_dimension_numbers<[1], [0], [0], [1], [0, 0, 1, 1], [], []>} : vector<12x20xbf16>, vector<20x512xbf16>, vector<12x512xf32> -> vector<12x512xf32>
    %c0_3 = arith.constant 0 : index
    %c0_4 = arith.constant 0 : index
    %4 = vector.load %arg3[%c0_3, %c0_4] : memref<1x512xf32, #tpu.memory_space<vmem>>, vector<1x512xf32>
    %5 = vector.broadcast %4 : vector<1x512xf32> to vector<12x512xf32>
    %6 = arith.addf %3, %5 : vector<12x512xf32>
    %cst_5 = arith.constant 0.000000e+00 : f32
    %7 = vector.broadcast %cst_5 : f32 to vector<2x128xf32>
    %cst_6 = arith.constant 0.000000e+00 : f32
    %8 = vector.broadcast %cst_6 : f32 to vector<2x128xf32>
    %9 = vector.extract_strided_slice %6 {offsets = [0, 0], sizes = [2, 512], strides = [1, 1]} : vector<12x512xf32> to vector<2x512xf32>
    %10 = arith.truncf %7 : vector<2x128xf32> to vector<2x128xbf16>
    %c0_7 = arith.constant 0 : index
    %c0_8 = arith.constant 0 : index
    %11 = vector.load %arg2[%c0_7, %c0_8] : memref<128x512xbf16, #tpu.memory_space<vmem>>, vector<128x512xbf16>
    %cst_9 = arith.constant dense<0.000000e+00> : vector<2x512xf32>
    %12 = tpu.matmul %10, %11, %cst_9 {dimension_numbers = #tpu.dot_dimension_numbers<[1], [0], [0], [1], [0, 0, 1, 1], [], []>} : vector<2x128xbf16>, vector<128x512xbf16>, vector<2x512xf32> -> vector<2x512xf32>
    %13 = arith.addf %9, %12 : vector<2x512xf32>
    %14 = vector.extract_strided_slice %13 {offsets = [0, 0], sizes = [2, 128], strides = [1, 1]} : vector<2x512xf32> to vector<2x128xf32>
    %15 = arith.negf %14 : vector<2x128xf32>
    %16 = math.exp %15 : vector<2x128xf32>
    %cst_10 = arith.constant 1.000000e+00 : f32
    %17 = vector.broadcast %cst_10 : f32 to vector<2x128xf32>
    %18 = arith.addf %17, %16 : vector<2x128xf32>
    %19 = arith.divf %17, %18 : vector<2x128xf32>
    %20 = vector.extract_strided_slice %13 {offsets = [0, 128], sizes = [2, 128], strides = [1, 1]} : vector<2x512xf32> to vector<2x128xf32>
    %21 = arith.negf %20 : vector<2x128xf32>
    %22 = math.exp %21 : vector<2x128xf32>
    %cst_11 = arith.constant 1.000000e+00 : f32
    %23 = vector.broadcast %cst_11 : f32 to vector<2x128xf32>
    %24 = arith.addf %23, %22 : vector<2x128xf32>
    %25 = arith.divf %23, %24 : vector<2x128xf32>
    %26 = vector.extract_strided_slice %13 {offsets = [0, 256], sizes = [2, 128], strides = [1, 1]} : vector<2x512xf32> to vector<2x128xf32>
    %27 = arith.negf %26 : vector<2x128xf32>
    %28 = math.exp %27 : vector<2x128xf32>
    %cst_12 = arith.constant 1.000000e+00 : f32
    %29 = vector.broadcast %cst_12 : f32 to vector<2x128xf32>
    %30 = arith.addf %29, %28 : vector<2x128xf32>
    %31 = arith.divf %29, %30 : vector<2x128xf32>
    %32 = vector.extract_strided_slice %13 {offsets = [0, 384], sizes = [2, 128], strides = [1, 1]} : vector<2x512xf32> to vector<2x128xf32>
    %33 = math.tanh %32 : vector<2x128xf32>
    %34 = arith.mulf %25, %8 : vector<2x128xf32>
    %35 = arith.mulf %19, %33 : vector<2x128xf32>
    %36 = arith.addf %34, %35 : vector<2x128xf32>
    %37 = math.tanh %36 : vector<2x128xf32>
    %38 = arith.mulf %31, %37 : vector<2x128xf32>
    %c0_13 = arith.constant 0 : index
    %c0_14 = arith.constant 0 : index
    %39 = vector.load %arg10[%c0_13, %c0_14] : memref<12x128xf32, #tpu.memory_space<vmem>>, vector<2x128xf32>
    tpu.vector_store %arg10[%c0_13, %c0_14], %38 {strides = array<i32>} : memref<12x128xf32, #tpu.memory_space<vmem>>, vector<2x128xf32>,
    %40 = vector.extract_strided_slice %6 {offsets = [2, 0], sizes = [2, 512], strides = [1, 1]} : vector<12x512xf32> to vector<2x512xf32>
    %41 = arith.truncf %38 : vector<2x128xf32> to vector<2x128xbf16>
    %c0_15 = arith.constant 0 : index
    %c0_16 = arith.constant 0 : index
    %42 = vector.load %arg2[%c0_15, %c0_16] : memref<128x512xbf16, #tpu.memory_space<vmem>>, vector<128x512xbf16>
    %cst_17 = arith.constant dense<0.000000e+00> : vector<2x512xf32>
    %43 = tpu.matmul %41, %42, %cst_17 {dimension_numbers = #tpu.dot_dimension_numbers<[1], [0], [0], [1], [0, 0, 1, 1], [], []>} : vector<2x128xbf16>, vector<128x512xbf16>, vector<2x512xf32> -> vector<2x512xf32>
    %44 = arith.addf %40, %43 : vector<2x512xf32>
    %45 = vector.extract_strided_slice %44 {offsets = [0, 0], sizes = [2, 128], strides = [1, 1]} : vector<2x512xf32> to vector<2x128xf32>
    %46 = arith.negf %45 : vector<2x128xf32>
    %47 = math.exp %46 : vector<2x128xf32>
    %cst_18 = arith.constant 1.000000e+00 : f32
    %48 = vector.broadcast %cst_18 : f32 to vector<2x128xf32>
    %49 = arith.addf %48, %47 : vector<2x128xf32>
    %50 = arith.divf %48, %49 : vector<2x128xf32>
    %51 = vector.extract_strided_slice %44 {offsets = [0, 128], sizes = [2, 128], strides = [1, 1]} : vector<2x512xf32> to vector<2x128xf32>
    %52 = arith.negf %51 : vector<2x128xf32>
    %53 = math.exp %52 : vector<2x128xf32>
    %cst_19 = arith.constant 1.000000e+00 : f32
    %54 = vector.broadcast %cst_19 : f32 to vector<2x128xf32>
    %55 = arith.addf %54, %53 : vector<2x128xf32>
    %56 = arith.divf %54, %55 : vector<2x128xf32>
    %57 = vector.extract_strided_slice %44 {offsets = [0, 256], sizes = [2, 128], strides = [1, 1]} : vector<2x512xf32> to vector<2x128xf32>
    %58 = arith.negf %57 : vector<2x128xf32>
    %59 = math.exp %58 : vector<2x128xf32>
    %cst_20 = arith.constant 1.000000e+00 : f32
    %60 = vector.broadcast %cst_20 : f32 to vector<2x128xf32>
    %61 = arith.addf %60, %59 : vector<2x128xf32>
    %62 = arith.divf %60, %61 : vector<2x128xf32>
    %63 = vector.extract_strided_slice %44 {offsets = [0, 384], sizes = [2, 128], strides = [1, 1]} : vector<2x512xf32> to vector<2x128xf32>
    %64 = math.tanh %63 : vector<2x128xf32>
    %65 = arith.mulf %56, %36 : vector<2x128xf32>
    %66 = arith.mulf %50, %64 : vector<2x128xf32>
    %67 = arith.addf %65, %66 : vector<2x128xf32>
    %68 = math.tanh %67 : vector<2x128xf32>
    %69 = arith.mulf %62, %68 : vector<2x128xf32>
    %c2 = arith.constant 2 : index
    %c0_21 = arith.constant 0 : index
    %70 = vector.load %arg10[%c2, %c0_21] : memref<12x128xf32, #tpu.memory_space<vmem>>, vector<2x128xf32>
    tpu.vector_store %arg10[%c2, %c0_21], %69 {strides = array<i32>} : memref<12x128xf32, #tpu.memory_space<vmem>>, vector<2x128xf32>,
    %71 = vector.extract_strided_slice %6 {offsets = [4, 0], sizes = [2, 512], strides = [1, 1]} : vector<12x512xf32> to vector<2x512xf32>
    %72 = arith.truncf %69 : vector<2x128xf32> to vector<2x128xbf16>
    %c0_22 = arith.constant 0 : index
    %c0_23 = arith.constant 0 : index
    %73 = vector.load %arg2[%c0_22, %c0_23] : memref<128x512xbf16, #tpu.memory_space<vmem>>, vector<128x512xbf16>
    %cst_24 = arith.constant dense<0.000000e+00> : vector<2x512xf32>
    %74 = tpu.matmul %72, %73, %cst_24 {dimension_numbers = #tpu.dot_dimension_numbers<[1], [0], [0], [1], [0, 0, 1, 1], [], []>} : vector<2x128xbf16>, vector<128x512xbf16>, vector<2x512xf32> -> vector<2x512xf32>
    %75 = arith.addf %71, %74 : vector<2x512xf32>
    %76 = vector.extract_strided_slice %75 {offsets = [0, 0], sizes = [2, 128], strides = [1, 1]} : vector<2x512xf32> to vector<2x128xf32>
    %77 = arith.negf %76 : vector<2x128xf32>
    %78 = math.exp %77 : vector<2x128xf32>
    %cst_25 = arith.constant 1.000000e+00 : f32
    %79 = vector.broadcast %cst_25 : f32 to vector<2x128xf32>
    %80 = arith.addf %79, %78 : vector<2x128xf32>
    %81 = arith.divf %79, %80 : vector<2x128xf32>
    %82 = vector.extract_strided_slice %75 {offsets = [0, 128], sizes = [2, 128], strides = [1, 1]} : vector<2x512xf32> to vector<2x128xf32>
    %83 = arith.negf %82 : vector<2x128xf32>
    %84 = math.exp %83 : vector<2x128xf32>
    %cst_26 = arith.constant 1.000000e+00 : f32
    %85 = vector.broadcast %cst_26 : f32 to vector<2x128xf32>
    %86 = arith.addf %85, %84 : vector<2x128xf32>
    %87 = arith.divf %85, %86 : vector<2x128xf32>
    %88 = vector.extract_strided_slice %75 {offsets = [0, 256], sizes = [2, 128], strides = [1, 1]} : vector<2x512xf32> to vector<2x128xf32>
    %89 = arith.negf %88 : vector<2x128xf32>
    %90 = math.exp %89 : vector<2x128xf32>
    %cst_27 = arith.constant 1.000000e+00 : f32
    %91 = vector.broadcast %cst_27 : f32 to vector<2x128xf32>
    %92 = arith.addf %91, %90 : vector<2x128xf32>
    %93 = arith.divf %91, %92 : vector<2x128xf32>
    %94 = vector.extract_strided_slice %75 {offsets = [0, 384], sizes = [2, 128], strides = [1, 1]} : vector<2x512xf32> to vector<2x128xf32>
    %95 = math.tanh %94 : vector<2x128xf32>
    %96 = arith.mulf %87, %67 : vector<2x128xf32>
    %97 = arith.mulf %81, %95 : vector<2x128xf32>
    %98 = arith.addf %96, %97 : vector<2x128xf32>
    %99 = math.tanh %98 : vector<2x128xf32>
    %100 = arith.mulf %93, %99 : vector<2x128xf32>
    %c4 = arith.constant 4 : index
    %c0_28 = arith.constant 0 : index
    %101 = vector.load %arg10[%c4, %c0_28] : memref<12x128xf32, #tpu.memory_space<vmem>>, vector<2x128xf32>
    tpu.vector_store %arg10[%c4, %c0_28], %100 {strides = array<i32>} : memref<12x128xf32, #tpu.memory_space<vmem>>, vector<2x128xf32>,
    %102 = vector.extract_strided_slice %6 {offsets = [6, 0], sizes = [2, 512], strides = [1, 1]} : vector<12x512xf32> to vector<2x512xf32>
    %103 = arith.truncf %100 : vector<2x128xf32> to vector<2x128xbf16>
    %c0_29 = arith.constant 0 : index
    %c0_30 = arith.constant 0 : index
    %104 = vector.load %arg2[%c0_29, %c0_30] : memref<128x512xbf16, #tpu.memory_space<vmem>>, vector<128x512xbf16>
    %cst_31 = arith.constant dense<0.000000e+00> : vector<2x512xf32>
    %105 = tpu.matmul %103, %104, %cst_31 {dimension_numbers = #tpu.dot_dimension_numbers<[1], [0], [0], [1], [0, 0, 1, 1], [], []>} : vector<2x128xbf16>, vector<128x512xbf16>, vector<2x512xf32> -> vector<2x512xf32>
    %106 = arith.addf %102, %105 : vector<2x512xf32>
    %107 = vector.extract_strided_slice %106 {offsets = [0, 0], sizes = [2, 128], strides = [1, 1]} : vector<2x512xf32> to vector<2x128xf32>
    %108 = arith.negf %107 : vector<2x128xf32>
    %109 = math.exp %108 : vector<2x128xf32>
    %cst_32 = arith.constant 1.000000e+00 : f32
    %110 = vector.broadcast %cst_32 : f32 to vector<2x128xf32>
    %111 = arith.addf %110, %109 : vector<2x128xf32>
    %112 = arith.divf %110, %111 : vector<2x128xf32>
    %113 = vector.extract_strided_slice %106 {offsets = [0, 128], sizes = [2, 128], strides = [1, 1]} : vector<2x512xf32> to vector<2x128xf32>
    %114 = arith.negf %113 : vector<2x128xf32>
    %115 = math.exp %114 : vector<2x128xf32>
    %cst_33 = arith.constant 1.000000e+00 : f32
    %116 = vector.broadcast %cst_33 : f32 to vector<2x128xf32>
    %117 = arith.addf %116, %115 : vector<2x128xf32>
    %118 = arith.divf %116, %117 : vector<2x128xf32>
    %119 = vector.extract_strided_slice %106 {offsets = [0, 256], sizes = [2, 128], strides = [1, 1]} : vector<2x512xf32> to vector<2x128xf32>
    %120 = arith.negf %119 : vector<2x128xf32>
    %121 = math.exp %120 : vector<2x128xf32>
    %cst_34 = arith.constant 1.000000e+00 : f32
    %122 = vector.broadcast %cst_34 : f32 to vector<2x128xf32>
    %123 = arith.addf %122, %121 : vector<2x128xf32>
    %124 = arith.divf %122, %123 : vector<2x128xf32>
    %125 = vector.extract_strided_slice %106 {offsets = [0, 384], sizes = [2, 128], strides = [1, 1]} : vector<2x512xf32> to vector<2x128xf32>
    %126 = math.tanh %125 : vector<2x128xf32>
    %127 = arith.mulf %118, %98 : vector<2x128xf32>
    %128 = arith.mulf %112, %126 : vector<2x128xf32>
    %129 = arith.addf %127, %128 : vector<2x128xf32>
    %130 = math.tanh %129 : vector<2x128xf32>
    %131 = arith.mulf %124, %130 : vector<2x128xf32>
    %c6 = arith.constant 6 : index
    %c0_35 = arith.constant 0 : index
    %132 = vector.load %arg10[%c6, %c0_35] : memref<12x128xf32, #tpu.memory_space<vmem>>, vector<2x128xf32>
    tpu.vector_store %arg10[%c6, %c0_35], %131 {strides = array<i32>} : memref<12x128xf32, #tpu.memory_space<vmem>>, vector<2x128xf32>,
    %133 = vector.extract_strided_slice %6 {offsets = [8, 0], sizes = [2, 512], strides = [1, 1]} : vector<12x512xf32> to vector<2x512xf32>
    %134 = arith.truncf %131 : vector<2x128xf32> to vector<2x128xbf16>
    %c0_36 = arith.constant 0 : index
    %c0_37 = arith.constant 0 : index
    %135 = vector.load %arg2[%c0_36, %c0_37] : memref<128x512xbf16, #tpu.memory_space<vmem>>, vector<128x512xbf16>
    %cst_38 = arith.constant dense<0.000000e+00> : vector<2x512xf32>
    %136 = tpu.matmul %134, %135, %cst_38 {dimension_numbers = #tpu.dot_dimension_numbers<[1], [0], [0], [1], [0, 0, 1, 1], [], []>} : vector<2x128xbf16>, vector<128x512xbf16>, vector<2x512xf32> -> vector<2x512xf32>
    %137 = arith.addf %133, %136 : vector<2x512xf32>
    %138 = vector.extract_strided_slice %137 {offsets = [0, 0], sizes = [2, 128], strides = [1, 1]} : vector<2x512xf32> to vector<2x128xf32>
    %139 = arith.negf %138 : vector<2x128xf32>
    %140 = math.exp %139 : vector<2x128xf32>
    %cst_39 = arith.constant 1.000000e+00 : f32
    %141 = vector.broadcast %cst_39 : f32 to vector<2x128xf32>
    %142 = arith.addf %141, %140 : vector<2x128xf32>
    %143 = arith.divf %141, %142 : vector<2x128xf32>
    %144 = vector.extract_strided_slice %137 {offsets = [0, 128], sizes = [2, 128], strides = [1, 1]} : vector<2x512xf32> to vector<2x128xf32>
    %145 = arith.negf %144 : vector<2x128xf32>
    %146 = math.exp %145 : vector<2x128xf32>
    %cst_40 = arith.constant 1.000000e+00 : f32
    %147 = vector.broadcast %cst_40 : f32 to vector<2x128xf32>
    %148 = arith.addf %147, %146 : vector<2x128xf32>
    %149 = arith.divf %147, %148 : vector<2x128xf32>
    %150 = vector.extract_strided_slice %137 {offsets = [0, 256], sizes = [2, 128], strides = [1, 1]} : vector<2x512xf32> to vector<2x128xf32>
    %151 = arith.negf %150 : vector<2x128xf32>
    %152 = math.exp %151 : vector<2x128xf32>
    %cst_41 = arith.constant 1.000000e+00 : f32
    %153 = vector.broadcast %cst_41 : f32 to vector<2x128xf32>
    %154 = arith.addf %153, %152 : vector<2x128xf32>
    %155 = arith.divf %153, %154 : vector<2x128xf32>
    %156 = vector.extract_strided_slice %137 {offsets = [0, 384], sizes = [2, 128], strides = [1, 1]} : vector<2x512xf32> to vector<2x128xf32>
    %157 = math.tanh %156 : vector<2x128xf32>
    %158 = arith.mulf %149, %129 : vector<2x128xf32>
    %159 = arith.mulf %143, %157 : vector<2x128xf32>
    %160 = arith.addf %158, %159 : vector<2x128xf32>
    %161 = math.tanh %160 : vector<2x128xf32>
    %162 = arith.mulf %155, %161 : vector<2x128xf32>
    %c8 = arith.constant 8 : index
    %c0_42 = arith.constant 0 : index
    %163 = vector.load %arg10[%c8, %c0_42] : memref<12x128xf32, #tpu.memory_space<vmem>>, vector<2x128xf32>
    tpu.vector_store %arg10[%c8, %c0_42], %162 {strides = array<i32>} : memref<12x128xf32, #tpu.memory_space<vmem>>, vector<2x128xf32>,
    %164 = vector.extract_strided_slice %6 {offsets = [10, 0], sizes = [2, 512], strides = [1, 1]} : vector<12x512xf32> to vector<2x512xf32>
    %165 = arith.truncf %162 : vector<2x128xf32> to vector<2x128xbf16>
    %c0_43 = arith.constant 0 : index
    %c0_44 = arith.constant 0 : index
    %166 = vector.load %arg2[%c0_43, %c0_44] : memref<128x512xbf16, #tpu.memory_space<vmem>>, vector<128x512xbf16>
    %cst_45 = arith.constant dense<0.000000e+00> : vector<2x512xf32>
    %167 = tpu.matmul %165, %166, %cst_45 {dimension_numbers = #tpu.dot_dimension_numbers<[1], [0], [0], [1], [0, 0, 1, 1], [], []>} : vector<2x128xbf16>, vector<128x512xbf16>, vector<2x512xf32> -> vector<2x512xf32>
    %168 = arith.addf %164, %167 : vector<2x512xf32>
    %169 = vector.extract_strided_slice %168 {offsets = [0, 0], sizes = [2, 128], strides = [1, 1]} : vector<2x512xf32> to vector<2x128xf32>
    %170 = arith.negf %169 : vector<2x128xf32>
    %171 = math.exp %170 : vector<2x128xf32>
    %cst_46 = arith.constant 1.000000e+00 : f32
    %172 = vector.broadcast %cst_46 : f32 to vector<2x128xf32>
    %173 = arith.addf %172, %171 : vector<2x128xf32>
    %174 = arith.divf %172, %173 : vector<2x128xf32>
    %175 = vector.extract_strided_slice %168 {offsets = [0, 128], sizes = [2, 128], strides = [1, 1]} : vector<2x512xf32> to vector<2x128xf32>
    %176 = arith.negf %175 : vector<2x128xf32>
    %177 = math.exp %176 : vector<2x128xf32>
    %cst_47 = arith.constant 1.000000e+00 : f32
    %178 = vector.broadcast %cst_47 : f32 to vector<2x128xf32>
    %179 = arith.addf %178, %177 : vector<2x128xf32>
    %180 = arith.divf %178, %179 : vector<2x128xf32>
    %181 = vector.extract_strided_slice %168 {offsets = [0, 256], sizes = [2, 128], strides = [1, 1]} : vector<2x512xf32> to vector<2x128xf32>
    %182 = arith.negf %181 : vector<2x128xf32>
    %183 = math.exp %182 : vector<2x128xf32>
    %cst_48 = arith.constant 1.000000e+00 : f32
    %184 = vector.broadcast %cst_48 : f32 to vector<2x128xf32>
    %185 = arith.addf %184, %183 : vector<2x128xf32>
    %186 = arith.divf %184, %185 : vector<2x128xf32>
    %187 = vector.extract_strided_slice %168 {offsets = [0, 384], sizes = [2, 128], strides = [1, 1]} : vector<2x512xf32> to vector<2x128xf32>
    %188 = math.tanh %187 : vector<2x128xf32>
    %189 = arith.mulf %180, %160 : vector<2x128xf32>
    %190 = arith.mulf %174, %188 : vector<2x128xf32>
    %191 = arith.addf %189, %190 : vector<2x128xf32>
    %192 = math.tanh %191 : vector<2x128xf32>
    %193 = arith.mulf %186, %192 : vector<2x128xf32>
    %c10 = arith.constant 10 : index
    %c0_49 = arith.constant 0 : index
    %194 = vector.load %arg10[%c10, %c0_49] : memref<12x128xf32, #tpu.memory_space<vmem>>, vector<2x128xf32>
    tpu.vector_store %arg10[%c10, %c0_49], %193 {strides = array<i32>} : memref<12x128xf32, #tpu.memory_space<vmem>>, vector<2x128xf32>,
    %c0_50 = arith.constant 0 : index
    %c0_51 = arith.constant 0 : index
    %195 = vector.load %arg10[%c0_50, %c0_51] : memref<12x128xf32, #tpu.memory_space<vmem>>, vector<12x128xf32>
    %196 = arith.truncf %195 : vector<12x128xf32> to vector<12x128xbf16>
    %c0_52 = arith.constant 0 : index
    %c0_53 = arith.constant 0 : index
    %197 = vector.load %arg4[%c0_52, %c0_53] : memref<128x512xbf16, #tpu.memory_space<vmem>>, vector<128x512xbf16>
    %cst_54 = arith.constant dense<0.000000e+00> : vector<12x512xf32>
    %198 = tpu.matmul %196, %197, %cst_54 {dimension_numbers = #tpu.dot_dimension_numbers<[1], [0], [0], [1], [0, 0, 1, 1], [], []>} : vector<12x128xbf16>, vector<128x512xbf16>, vector<12x512xf32> -> vector<12x512xf32>
    %c0_55 = arith.constant 0 : index
    %c0_56 = arith.constant 0 : index
    %199 = vector.load %arg6[%c0_55, %c0_56] : memref<1x512xf32, #tpu.memory_space<vmem>>, vector<1x512xf32>
    %200 = vector.broadcast %199 : vector<1x512xf32> to vector<12x512xf32>
    %201 = arith.addf %198, %200 : vector<12x512xf32>
    %cst_57 = arith.constant 0.000000e+00 : f32
    %202 = vector.broadcast %cst_57 : f32 to vector<2x128xf32>
    %cst_58 = arith.constant 0.000000e+00 : f32
    %203 = vector.broadcast %cst_58 : f32 to vector<2x128xf32>
    %204 = vector.extract_strided_slice %201 {offsets = [0, 0], sizes = [2, 512], strides = [1, 1]} : vector<12x512xf32> to vector<2x512xf32>
    %205 = arith.truncf %202 : vector<2x128xf32> to vector<2x128xbf16>
    %c0_59 = arith.constant 0 : index
    %c0_60 = arith.constant 0 : index
    %206 = vector.load %arg5[%c0_59, %c0_60] : memref<128x512xbf16, #tpu.memory_space<vmem>>, vector<128x512xbf16>
    %cst_61 = arith.constant dense<0.000000e+00> : vector<2x512xf32>
    %207 = tpu.matmul %205, %206, %cst_61 {dimension_numbers = #tpu.dot_dimension_numbers<[1], [0], [0], [1], [0, 0, 1, 1], [], []>} : vector<2x128xbf16>, vector<128x512xbf16>, vector<2x512xf32> -> vector<2x512xf32>
    %208 = arith.addf %204, %207 : vector<2x512xf32>
    %209 = vector.extract_strided_slice %208 {offsets = [0, 0], sizes = [2, 128], strides = [1, 1]} : vector<2x512xf32> to vector<2x128xf32>
    %210 = arith.negf %209 : vector<2x128xf32>
    %211 = math.exp %210 : vector<2x128xf32>
    %cst_62 = arith.constant 1.000000e+00 : f32
    %212 = vector.broadcast %cst_62 : f32 to vector<2x128xf32>
    %213 = arith.addf %212, %211 : vector<2x128xf32>
    %214 = arith.divf %212, %213 : vector<2x128xf32>
    %215 = vector.extract_strided_slice %208 {offsets = [0, 128], sizes = [2, 128], strides = [1, 1]} : vector<2x512xf32> to vector<2x128xf32>
    %216 = arith.negf %215 : vector<2x128xf32>
    %217 = math.exp %216 : vector<2x128xf32>
    %cst_63 = arith.constant 1.000000e+00 : f32
    %218 = vector.broadcast %cst_63 : f32 to vector<2x128xf32>
    %219 = arith.addf %218, %217 : vector<2x128xf32>
    %220 = arith.divf %218, %219 : vector<2x128xf32>
    %221 = vector.extract_strided_slice %208 {offsets = [0, 256], sizes = [2, 128], strides = [1, 1]} : vector<2x512xf32> to vector<2x128xf32>
    %222 = arith.negf %221 : vector<2x128xf32>
    %223 = math.exp %222 : vector<2x128xf32>
    %cst_64 = arith.constant 1.000000e+00 : f32
    %224 = vector.broadcast %cst_64 : f32 to vector<2x128xf32>
    %225 = arith.addf %224, %223 : vector<2x128xf32>
    %226 = arith.divf %224, %225 : vector<2x128xf32>
    %227 = vector.extract_strided_slice %208 {offsets = [0, 384], sizes = [2, 128], strides = [1, 1]} : vector<2x512xf32> to vector<2x128xf32>
    %228 = math.tanh %227 : vector<2x128xf32>
    %229 = arith.mulf %220, %203 : vector<2x128xf32>
    %230 = arith.mulf %214, %228 : vector<2x128xf32>
    %231 = arith.addf %229, %230 : vector<2x128xf32>
    %232 = math.tanh %231 : vector<2x128xf32>
    %233 = arith.mulf %226, %232 : vector<2x128xf32>
    %234 = vector.extract_strided_slice %201 {offsets = [2, 0], sizes = [2, 512], strides = [1, 1]} : vector<12x512xf32> to vector<2x512xf32>
    %235 = arith.truncf %233 : vector<2x128xf32> to vector<2x128xbf16>
    %c0_65 = arith.constant 0 : index
    %c0_66 = arith.constant 0 : index
    %236 = vector.load %arg5[%c0_65, %c0_66] : memref<128x512xbf16, #tpu.memory_space<vmem>>, vector<128x512xbf16>
    %cst_67 = arith.constant dense<0.000000e+00> : vector<2x512xf32>
    %237 = tpu.matmul %235, %236, %cst_67 {dimension_numbers = #tpu.dot_dimension_numbers<[1], [0], [0], [1], [0, 0, 1, 1], [], []>} : vector<2x128xbf16>, vector<128x512xbf16>, vector<2x512xf32> -> vector<2x512xf32>
    %238 = arith.addf %234, %237 : vector<2x512xf32>
    %239 = vector.extract_strided_slice %238 {offsets = [0, 0], sizes = [2, 128], strides = [1, 1]} : vector<2x512xf32> to vector<2x128xf32>
    %240 = arith.negf %239 : vector<2x128xf32>
    %241 = math.exp %240 : vector<2x128xf32>
    %cst_68 = arith.constant 1.000000e+00 : f32
    %242 = vector.broadcast %cst_68 : f32 to vector<2x128xf32>
    %243 = arith.addf %242, %241 : vector<2x128xf32>
    %244 = arith.divf %242, %243 : vector<2x128xf32>
    %245 = vector.extract_strided_slice %238 {offsets = [0, 128], sizes = [2, 128], strides = [1, 1]} : vector<2x512xf32> to vector<2x128xf32>
    %246 = arith.negf %245 : vector<2x128xf32>
    %247 = math.exp %246 : vector<2x128xf32>
    %cst_69 = arith.constant 1.000000e+00 : f32
    %248 = vector.broadcast %cst_69 : f32 to vector<2x128xf32>
    %249 = arith.addf %248, %247 : vector<2x128xf32>
    %250 = arith.divf %248, %249 : vector<2x128xf32>
    %251 = vector.extract_strided_slice %238 {offsets = [0, 256], sizes = [2, 128], strides = [1, 1]} : vector<2x512xf32> to vector<2x128xf32>
    %252 = arith.negf %251 : vector<2x128xf32>
    %253 = math.exp %252 : vector<2x128xf32>
    %cst_70 = arith.constant 1.000000e+00 : f32
    %254 = vector.broadcast %cst_70 : f32 to vector<2x128xf32>
    %255 = arith.addf %254, %253 : vector<2x128xf32>
    %256 = arith.divf %254, %255 : vector<2x128xf32>
    %257 = vector.extract_strided_slice %238 {offsets = [0, 384], sizes = [2, 128], strides = [1, 1]} : vector<2x512xf32> to vector<2x128xf32>
    %258 = math.tanh %257 : vector<2x128xf32>
    %259 = arith.mulf %250, %231 : vector<2x128xf32>
    %260 = arith.mulf %244, %258 : vector<2x128xf32>
    %261 = arith.addf %259, %260 : vector<2x128xf32>
    %262 = math.tanh %261 : vector<2x128xf32>
    %263 = arith.mulf %256, %262 : vector<2x128xf32>
    %264 = vector.extract_strided_slice %201 {offsets = [4, 0], sizes = [2, 512], strides = [1, 1]} : vector<12x512xf32> to vector<2x512xf32>
    %265 = arith.truncf %263 : vector<2x128xf32> to vector<2x128xbf16>
    %c0_71 = arith.constant 0 : index
    %c0_72 = arith.constant 0 : index
    %266 = vector.load %arg5[%c0_71, %c0_72] : memref<128x512xbf16, #tpu.memory_space<vmem>>, vector<128x512xbf16>
    %cst_73 = arith.constant dense<0.000000e+00> : vector<2x512xf32>
    %267 = tpu.matmul %265, %266, %cst_73 {dimension_numbers = #tpu.dot_dimension_numbers<[1], [0], [0], [1], [0, 0, 1, 1], [], []>} : vector<2x128xbf16>, vector<128x512xbf16>, vector<2x512xf32> -> vector<2x512xf32>
    %268 = arith.addf %264, %267 : vector<2x512xf32>
    %269 = vector.extract_strided_slice %268 {offsets = [0, 0], sizes = [2, 128], strides = [1, 1]} : vector<2x512xf32> to vector<2x128xf32>
    %270 = arith.negf %269 : vector<2x128xf32>
    %271 = math.exp %270 : vector<2x128xf32>
    %cst_74 = arith.constant 1.000000e+00 : f32
    %272 = vector.broadcast %cst_74 : f32 to vector<2x128xf32>
    %273 = arith.addf %272, %271 : vector<2x128xf32>
    %274 = arith.divf %272, %273 : vector<2x128xf32>
    %275 = vector.extract_strided_slice %268 {offsets = [0, 128], sizes = [2, 128], strides = [1, 1]} : vector<2x512xf32> to vector<2x128xf32>
    %276 = arith.negf %275 : vector<2x128xf32>
    %277 = math.exp %276 : vector<2x128xf32>
    %cst_75 = arith.constant 1.000000e+00 : f32
    %278 = vector.broadcast %cst_75 : f32 to vector<2x128xf32>
    %279 = arith.addf %278, %277 : vector<2x128xf32>
    %280 = arith.divf %278, %279 : vector<2x128xf32>
    %281 = vector.extract_strided_slice %268 {offsets = [0, 256], sizes = [2, 128], strides = [1, 1]} : vector<2x512xf32> to vector<2x128xf32>
    %282 = arith.negf %281 : vector<2x128xf32>
    %283 = math.exp %282 : vector<2x128xf32>
    %cst_76 = arith.constant 1.000000e+00 : f32
    %284 = vector.broadcast %cst_76 : f32 to vector<2x128xf32>
    %285 = arith.addf %284, %283 : vector<2x128xf32>
    %286 = arith.divf %284, %285 : vector<2x128xf32>
    %287 = vector.extract_strided_slice %268 {offsets = [0, 384], sizes = [2, 128], strides = [1, 1]} : vector<2x512xf32> to vector<2x128xf32>
    %288 = math.tanh %287 : vector<2x128xf32>
    %289 = arith.mulf %280, %261 : vector<2x128xf32>
    %290 = arith.mulf %274, %288 : vector<2x128xf32>
    %291 = arith.addf %289, %290 : vector<2x128xf32>
    %292 = math.tanh %291 : vector<2x128xf32>
    %293 = arith.mulf %286, %292 : vector<2x128xf32>
    %294 = vector.extract_strided_slice %201 {offsets = [6, 0], sizes = [2, 512], strides = [1, 1]} : vector<12x512xf32> to vector<2x512xf32>
    %295 = arith.truncf %293 : vector<2x128xf32> to vector<2x128xbf16>
    %c0_77 = arith.constant 0 : index
    %c0_78 = arith.constant 0 : index
    %296 = vector.load %arg5[%c0_77, %c0_78] : memref<128x512xbf16, #tpu.memory_space<vmem>>, vector<128x512xbf16>
    %cst_79 = arith.constant dense<0.000000e+00> : vector<2x512xf32>
    %297 = tpu.matmul %295, %296, %cst_79 {dimension_numbers = #tpu.dot_dimension_numbers<[1], [0], [0], [1], [0, 0, 1, 1], [], []>} : vector<2x128xbf16>, vector<128x512xbf16>, vector<2x512xf32> -> vector<2x512xf32>
    %298 = arith.addf %294, %297 : vector<2x512xf32>
    %299 = vector.extract_strided_slice %298 {offsets = [0, 0], sizes = [2, 128], strides = [1, 1]} : vector<2x512xf32> to vector<2x128xf32>
    %300 = arith.negf %299 : vector<2x128xf32>
    %301 = math.exp %300 : vector<2x128xf32>
    %cst_80 = arith.constant 1.000000e+00 : f32
    %302 = vector.broadcast %cst_80 : f32 to vector<2x128xf32>
    %303 = arith.addf %302, %301 : vector<2x128xf32>
    %304 = arith.divf %302, %303 : vector<2x128xf32>
    %305 = vector.extract_strided_slice %298 {offsets = [0, 128], sizes = [2, 128], strides = [1, 1]} : vector<2x512xf32> to vector<2x128xf32>
    %306 = arith.negf %305 : vector<2x128xf32>
    %307 = math.exp %306 : vector<2x128xf32>
    %cst_81 = arith.constant 1.000000e+00 : f32
    %308 = vector.broadcast %cst_81 : f32 to vector<2x128xf32>
    %309 = arith.addf %308, %307 : vector<2x128xf32>
    %310 = arith.divf %308, %309 : vector<2x128xf32>
    %311 = vector.extract_strided_slice %298 {offsets = [0, 256], sizes = [2, 128], strides = [1, 1]} : vector<2x512xf32> to vector<2x128xf32>
    %312 = arith.negf %311 : vector<2x128xf32>
    %313 = math.exp %312 : vector<2x128xf32>
    %cst_82 = arith.constant 1.000000e+00 : f32
    %314 = vector.broadcast %cst_82 : f32 to vector<2x128xf32>
    %315 = arith.addf %314, %313 : vector<2x128xf32>
    %316 = arith.divf %314, %315 : vector<2x128xf32>
    %317 = vector.extract_strided_slice %298 {offsets = [0, 384], sizes = [2, 128], strides = [1, 1]} : vector<2x512xf32> to vector<2x128xf32>
    %318 = math.tanh %317 : vector<2x128xf32>
    %319 = arith.mulf %310, %291 : vector<2x128xf32>
    %320 = arith.mulf %304, %318 : vector<2x128xf32>
    %321 = arith.addf %319, %320 : vector<2x128xf32>
    %322 = math.tanh %321 : vector<2x128xf32>
    %323 = arith.mulf %316, %322 : vector<2x128xf32>
    %324 = vector.extract_strided_slice %201 {offsets = [8, 0], sizes = [2, 512], strides = [1, 1]} : vector<12x512xf32> to vector<2x512xf32>
    %325 = arith.truncf %323 : vector<2x128xf32> to vector<2x128xbf16>
    %c0_83 = arith.constant 0 : index
    %c0_84 = arith.constant 0 : index
    %326 = vector.load %arg5[%c0_83, %c0_84] : memref<128x512xbf16, #tpu.memory_space<vmem>>, vector<128x512xbf16>
    %cst_85 = arith.constant dense<0.000000e+00> : vector<2x512xf32>
    %327 = tpu.matmul %325, %326, %cst_85 {dimension_numbers = #tpu.dot_dimension_numbers<[1], [0], [0], [1], [0, 0, 1, 1], [], []>} : vector<2x128xbf16>, vector<128x512xbf16>, vector<2x512xf32> -> vector<2x512xf32>
    %328 = arith.addf %324, %327 : vector<2x512xf32>
    %329 = vector.extract_strided_slice %328 {offsets = [0, 0], sizes = [2, 128], strides = [1, 1]} : vector<2x512xf32> to vector<2x128xf32>
    %330 = arith.negf %329 : vector<2x128xf32>
    %331 = math.exp %330 : vector<2x128xf32>
    %cst_86 = arith.constant 1.000000e+00 : f32
    %332 = vector.broadcast %cst_86 : f32 to vector<2x128xf32>
    %333 = arith.addf %332, %331 : vector<2x128xf32>
    %334 = arith.divf %332, %333 : vector<2x128xf32>
    %335 = vector.extract_strided_slice %328 {offsets = [0, 128], sizes = [2, 128], strides = [1, 1]} : vector<2x512xf32> to vector<2x128xf32>
    %336 = arith.negf %335 : vector<2x128xf32>
    %337 = math.exp %336 : vector<2x128xf32>
    %cst_87 = arith.constant 1.000000e+00 : f32
    %338 = vector.broadcast %cst_87 : f32 to vector<2x128xf32>
    %339 = arith.addf %338, %337 : vector<2x128xf32>
    %340 = arith.divf %338, %339 : vector<2x128xf32>
    %341 = vector.extract_strided_slice %328 {offsets = [0, 256], sizes = [2, 128], strides = [1, 1]} : vector<2x512xf32> to vector<2x128xf32>
    %342 = arith.negf %341 : vector<2x128xf32>
    %343 = math.exp %342 : vector<2x128xf32>
    %cst_88 = arith.constant 1.000000e+00 : f32
    %344 = vector.broadcast %cst_88 : f32 to vector<2x128xf32>
    %345 = arith.addf %344, %343 : vector<2x128xf32>
    %346 = arith.divf %344, %345 : vector<2x128xf32>
    %347 = vector.extract_strided_slice %328 {offsets = [0, 384], sizes = [2, 128], strides = [1, 1]} : vector<2x512xf32> to vector<2x128xf32>
    %348 = math.tanh %347 : vector<2x128xf32>
    %349 = arith.mulf %340, %321 : vector<2x128xf32>
    %350 = arith.mulf %334, %348 : vector<2x128xf32>
    %351 = arith.addf %349, %350 : vector<2x128xf32>
    %352 = math.tanh %351 : vector<2x128xf32>
    %353 = arith.mulf %346, %352 : vector<2x128xf32>
    %354 = vector.extract_strided_slice %201 {offsets = [10, 0], sizes = [2, 512], strides = [1, 1]} : vector<12x512xf32> to vector<2x512xf32>
    %355 = arith.truncf %353 : vector<2x128xf32> to vector<2x128xbf16>
    %c0_89 = arith.constant 0 : index
    %c0_90 = arith.constant 0 : index
    %356 = vector.load %arg5[%c0_89, %c0_90] : memref<128x512xbf16, #tpu.memory_space<vmem>>, vector<128x512xbf16>
    %cst_91 = arith.constant dense<0.000000e+00> : vector<2x512xf32>
    %357 = tpu.matmul %355, %356, %cst_91 {dimension_numbers = #tpu.dot_dimension_numbers<[1], [0], [0], [1], [0, 0, 1, 1], [], []>} : vector<2x128xbf16>, vector<128x512xbf16>, vector<2x512xf32> -> vector<2x512xf32>
    %358 = arith.addf %354, %357 : vector<2x512xf32>
    %359 = vector.extract_strided_slice %358 {offsets = [0, 0], sizes = [2, 128], strides = [1, 1]} : vector<2x512xf32> to vector<2x128xf32>
    %360 = arith.negf %359 : vector<2x128xf32>
    %361 = math.exp %360 : vector<2x128xf32>
    %cst_92 = arith.constant 1.000000e+00 : f32
    %362 = vector.broadcast %cst_92 : f32 to vector<2x128xf32>
    %363 = arith.addf %362, %361 : vector<2x128xf32>
    %364 = arith.divf %362, %363 : vector<2x128xf32>
    %365 = vector.extract_strided_slice %358 {offsets = [0, 128], sizes = [2, 128], strides = [1, 1]} : vector<2x512xf32> to vector<2x128xf32>
    %366 = arith.negf %365 : vector<2x128xf32>
    %367 = math.exp %366 : vector<2x128xf32>
    %cst_93 = arith.constant 1.000000e+00 : f32
    %368 = vector.broadcast %cst_93 : f32 to vector<2x128xf32>
    %369 = arith.addf %368, %367 : vector<2x128xf32>
    %370 = arith.divf %368, %369 : vector<2x128xf32>
    %371 = vector.extract_strided_slice %358 {offsets = [0, 256], sizes = [2, 128], strides = [1, 1]} : vector<2x512xf32> to vector<2x128xf32>
    %372 = arith.negf %371 : vector<2x128xf32>
    %373 = math.exp %372 : vector<2x128xf32>
    %cst_94 = arith.constant 1.000000e+00 : f32
    %374 = vector.broadcast %cst_94 : f32 to vector<2x128xf32>
    %375 = arith.addf %374, %373 : vector<2x128xf32>
    %376 = arith.divf %374, %375 : vector<2x128xf32>
    %377 = vector.extract_strided_slice %358 {offsets = [0, 384], sizes = [2, 128], strides = [1, 1]} : vector<2x512xf32> to vector<2x128xf32>
    %378 = math.tanh %377 : vector<2x128xf32>
    %379 = arith.mulf %370, %351 : vector<2x128xf32>
    %380 = arith.mulf %364, %378 : vector<2x128xf32>
    %381 = arith.addf %379, %380 : vector<2x128xf32>
    %382 = math.tanh %381 : vector<2x128xf32>
    %383 = arith.mulf %376, %382 : vector<2x128xf32>
    %384 = arith.truncf %383 : vector<2x128xf32> to vector<2x128xbf16>
    %c0_95 = arith.constant 0 : index
    %c0_96 = arith.constant 0 : index
    %385 = vector.load %arg7[%c0_95, %c0_96] : memref<128x12xbf16, #tpu.memory_space<vmem>>, vector<128x12xbf16>
    %cst_97 = arith.constant dense<0.000000e+00> : vector<2x12xf32>
    %386 = tpu.matmul %384, %385, %cst_97 {dimension_numbers = #tpu.dot_dimension_numbers<[1], [0], [0], [1], [0, 0, 1, 1], [], []>} : vector<2x128xbf16>, vector<128x12xbf16>, vector<2x12xf32> -> vector<2x12xf32>
    %c0_98 = arith.constant 0 : index
    %c0_99 = arith.constant 0 : index
    %387 = vector.load %arg8[%c0_98, %c0_99] : memref<1x12xf32, #tpu.memory_space<vmem>>, vector<1x12xf32>
    %388 = vector.broadcast %387 : vector<1x12xf32> to vector<2x12xf32>
    %389 = arith.addf %386, %388 : vector<2x12xf32>
    %c0_100 = arith.constant 0 : index
    %c0_101 = arith.constant 0 : index
    %390 = vector.load %arg9[%c0_100, %c0_101] : memref<2x12xf32, #tpu.memory_space<vmem>>, vector<2x12xf32>
    tpu.vector_store %arg9[%c0_100, %c0_101], %389 {strides = array<i32>} : memref<2x12xf32, #tpu.memory_space<vmem>>, vector<2x12xf32>,
    return
  }
}

</mosaic_0001>

<bundles_post_ra>
// kernel: tpu_custom_call.1
= control target key start
LH: loop header
LB: loop body
LE: loop exit
PB: predicated region body
PF: predicated region fallthrough
CT: control target
= control target key end

     0   :  { %14 = vsyncpa [#allocation4], 0  ;;  %s5282_s0 = inlined_call_operand.vmem [shape: f32[12,20], index: 0, kind: input, shape index: {}]   ;;  %s5283_s1 = inlined_call_operand.vmem [shape: bf16[20,512], index: 1, kind: input, shape index: {}]   ;;  %s5284_s2 = inlined_call_operand.hbm [shape: bf16[128,512], index: 2, kind: input, shape index: {}]   ;;  %s5285_s3 = inlined_call_operand.vmem [shape: f32[1,512], index: 3, kind: input, shape index: {}]   ;;  %s5286_s4 = inlined_call_operand.hbm [shape: bf16[128,512], index: 4, kind: input, shape index: {}]   ;;  %s5287_s5 = inlined_call_operand.hbm [shape: bf16[128,512], index: 5, kind: input, shape index: {}]   ;;  %s5288_s6 = inlined_call_operand.vmem [shape: f32[1,512], index: 6, kind: input, shape index: {}]   ;;  %s5289_s7 = inlined_call_operand.vmem [shape: bf16[128,12], index: 7, kind: input, shape index: {}]   ;;  %s5290_s8 = inlined_call_operand.vmem [shape: f32[1,12], index: 8, kind: input, shape index: {}]   ;;  %s5291_s9 = inlined_call_operand.hbm [shape: f32[2,12], index: 9, kind: output, shape index: {}]  }
   0x1   :  { %15 = vsyncpa [#allocation7], 0 }
   0x2   :  { %16 = vsyncpa [#allocation5], 0  ;;  %s4346_s30 = smov [#allocation6]   ;;  %s4347_s11 = smov [#allocation3]  }
   0x3   :  { %s40_s10 = sshll.u32 %s4346_s30, 4  ;;  %s26_s12 = sshll.u32 %s4347_s11, 4  ;;  %s41_s10 = int_to_ptr.vmem [resolvable:$true] %s40_s10  ;;  %s4405_s12 = int_to_ptr.vmem [resolvable:$true] %s26_s12 }
   0x4   :  { %s4252_s15 = scalar_lea.hbm %s5286_s4, 4096 }
   0x5   :  { %p4253_p0 = scmp.ne.s32.totalorder %s5286_s4, %s4252_s15  ;;  %p4256_p1 = scmp.lt.u32.totalorder %s4252_s15, %s5286_s4 }
   0x7   :  { %p4258_p2 = pnand %p4256_p1, %p4253_p0 }
   0x9   :  { %4261 = shalt.err (!%p4258_p2)
}
   0xa   :  { %s4262_s20 = scalar_lea.vmem %s41_s10, 4096  ;;  %p4267_p4 = scmp.lt.s32.totalorder %s41_s10, %s41_s10 }
   0xb   :  { %p4263_p3 = scmp.ne.s32.totalorder %s41_s10, %s4262_s20  ;;  %p4268_p5 = scmp.lt.s32.totalorder %s4262_s20, %s4262_s20 }
   0xd   :  { %p4269_p6 = por %p4268_p5, %p4267_p4 }
   0xf   :  { %p4270_p7 = pnand %p4269_p6, %p4263_p3 }
  0x11   :  { %4273 = shalt.err (!%p4270_p7)
}
  0x12   :  { %s4348_s21 = smov 256   ;;  %s4349_s22 = smov 16  }
  0x13   :  { %46 = dma.hbm_to_vmem [thread:$0]  %s5286_s4, 4096, %s41_s10, [#allocation7], %s4348_s21, %s4348_s21, %s4349_s22  }
  0x14   :  { %s4274_s27 = scalar_lea.hbm %s5284_s2, 4096 }
  0x15   :  { %p4275_p8 = scmp.ne.s32.totalorder %s5284_s2, %s4274_s27  ;;  %p4278_p9 = scmp.lt.u32.totalorder %s4274_s27, %s5284_s2 }
  0x17   :  { %p4280_p10 = pnand %p4278_p9, %p4275_p8 }
  0x19   :  { %4283 = shalt.err (!%p4280_p10)
}
  0x1a   :  { %s4284_s13 = scalar_lea.vmem %s4405_s12, 4096  ;;  %p4289_p12 = scmp.lt.s32.totalorder %s4405_s12, %s4405_s12 }
  0x1b   :  { %p4285_p11 = scmp.ne.s32.totalorder %s4405_s12, %s4284_s13  ;;  %p4290_p13 = scmp.lt.s32.totalorder %s4284_s13, %s4284_s13 }
  0x1d   :  { %p4291_p0 = por %p4290_p13, %p4289_p12 }
  0x1f   :  { %p4292_p1 = pnand %p4291_p0, %p4285_p11 }
  0x21   :  { %4295 = shalt.err (!%p4292_p1)
}
  0x22   :  { %32 = dma.hbm_to_vmem [thread:$0]  %s5284_s2, 4096, %s4405_s12, [#allocation4], %s4348_s21, %s4348_s21, %s4349_s22  }
  0x23   :  { %s4350_s14 = smov [#allocation8]   ;;  %s4296_s18 = scalar_lea.hbm %s5287_s5, 4096 }
  0x24   :  { %s52_s15 = sshll.u32 %s4350_s14, 4  ;;  %p4297_p2 = scmp.ne.s32.totalorder %s5287_s5, %s4296_s18  ;;  %s53_s15 = int_to_ptr.vmem [resolvable:$true] %s52_s15 }
  0x25   :  { %p4300_p3 = scmp.lt.u32.totalorder %s4296_s18, %s5287_s5 }
  0x27   :  { %p4302_p4 = pnand %p4300_p3, %p4297_p2 }
  0x29   :  { %4305 = shalt.err (!%p4302_p4)
}
  0x2a   :  { %s4306_s25 = scalar_lea.vmem %s53_s15, 4096  ;;  %p4311_p6 = scmp.lt.s32.totalorder %s53_s15, %s53_s15 }
  0x2b   :  { %p4307_p5 = scmp.ne.s32.totalorder %s53_s15, %s4306_s25  ;;  %p4312_p7 = scmp.lt.s32.totalorder %s4306_s25, %s4306_s25 }
  0x2d   :  { %p4313_p8 = por %p4312_p7, %p4311_p6 }
  0x2f   :  { %p4314_p9 = pnand %p4313_p8, %p4307_p5 }
  0x31   :  { %4317 = shalt.err (!%p4314_p9)
}
  0x32   :  { %58 = dma.hbm_to_vmem [thread:$0]  %s5287_s5, 4096, %s53_s15, [#allocation7], %s4348_s21, %s4348_s21, %s4349_s22  }
  0x33   :  { %4340 = dma.done.wait [#allocation4], 4096  }
  0x34   :  { %4341 = vsyncadd [#allocation4], 4294963200 }
  0x35   :  { %4342 = dma.done.wait [#allocation7], 8192  }
  0x36   :  { %4343 = vsyncadd [#allocation7], 4294959104  ;;  %v4351_v0 = vmov 0   ;;  %v3850_v1 = vld [vmem:[%s5283_s1 + $0x4] ss:$16 sps:$4 sm:$0xff]   ;;  %vm140_vm0 = vcmask 1041408   ;;  %v86_v48 = vlaneseq }
  0x37   :  { %185 = vmatprep.mubr.bf16.mxu1 %v4351_v0  ;;  %463 = vmatprep.mubr.bf16.mxu0 %v4351_v0  ;;  %v4462_v2 = vld [vmem:[#allocation3 + $0x4] ss:$16 sps:$4 sm:$0xff]   ;;  %v3854_v3 = vld [vmem:[%s5283_s1] ss:$16 sps:$4 sm:$0xff]   ;;  %v76_v11 = vld [vmem:[%s5282_s0 + $0x8] sm:$0xf] }
  0x38   :  { %153 = vmatprep.subr.bf16.mxu1 %v3850_v1  ;;  %v4467_v4 = vld [vmem:[#allocation3] ss:$16 sps:$4 sm:$0xff]   ;;  %431 = vmatprep.subr.bf16.mxu0 %v4462_v2  ;;  %v4473_v7 = vld [vmem:[#allocation3 + $0x24] ss:$16 sps:$4 sm:$0xff]   ;;  %v3863_v13 = vld [vmem:[%s5283_s1 + $0xc] ss:$16 sps:$4 sm:$0xff]  }
  0x39   :  { %v82_v5 = vld [vmem:[%s5283_s1 + $0x20] sm:$0x33]  ;;  %154 = vmatpush1.bf16.msra.mxu1 %v3854_v3  ;;  %432 = vmatpush1.bf16.msra.mxu0 %v4467_v4  ;;  %v3861_v15 = vld [vmem:[%s5283_s1 + $0x8] ss:$16 sps:$4 sm:$0xff]   ;;  %vm136_vm1 = vcmask 162816   ;;  %v4625_v49 = vshrl.u32 %v86_v48, 7 }
  0x3a   :  { %v3504_v6 = vcombine.high %v82_v5, %v82_v5  ;;  %v3503_v8 = vcombine.low %v82_v5, %v82_v5  ;;  %v4476_v9 = vld [vmem:[#allocation3 + $0x20] ss:$16 sps:$4 sm:$0xff]   ;;  %433 = vmatprep.subr.bf16.mxu0 %v4473_v7  ;;  %v4493_v16 = vld [vmem:[#allocation3 + $0x44] ss:$16 sps:$4 sm:$0xff]   ;;  %v83_v17 = vld [vmem:[%s5283_s1 + $0x28] sm:$0x33] }
  0x3b   :  { %v75_v10 = vld [vmem:[%s5282_s0] sm:$0xff]  ;;  %v3506_v19 = vcombine.high %v83_v17, %v83_v17  ;;  %v3505_v21 = vcombine.low %v83_v17, %v83_v17  ;;  %v4513_v25 = vld [vmem:[#allocation3 + $0xc] ss:$16 sps:$4 sm:$0xff]   ;;  %v4516_v26 = vld [vmem:[#allocation3 + $0x8] ss:$16 sps:$4 sm:$0xff]   ;;  %v88_v50 = vsub.s32 0, %v4625_v49 }
  0x3c   :  { %3507 = vmatprep.subr.msk.bf16.mxu1 %vm140_vm0, %v3504_v6  ;;  %v142_v12 = vsel %vm140_vm0, %v3503_v8, 0  ;;  %v77_v14 = vpack.c.bf16 %v76_v11, %v75_v10  ;;  %v4499_v18 = vld [vmem:[#allocation3 + $0x40] ss:$16 sps:$4 sm:$0xff]   ;;  %v4502_v20 = vld [vmem:[#allocation3 + $0x64] ss:$16 sps:$4 sm:$0xff]   ;;  %v92_v52 = vsub.s32 1, %v4625_v49 }
  0x3d   :  { %156 = vmatpush1.bf16.msra.mxu1 %v142_v12  ;;  %434 = vmatpush1.bf16.msra.mxu0 %v4476_v9  ;;  %v4505_v22 = vld [vmem:[#allocation3 + $0x60] ss:$16 sps:$4 sm:$0xff]   ;;  %v4508_v23 = vld [vmem:[#allocation3 + $0x84] ss:$16 sps:$4 sm:$0xff]   ;;  %v148_v24 = vsel %vm140_vm0, %v3505_v21, 0  ;;  %v96_v60 = vsub.s32 2, %v4625_v49 }
  0x3e   :  { %196 = vmatprep.subr.bf16.mxu1 %v3863_v13  ;;  %435 = vmatprep.subr.bf16.mxu0 %v4493_v16  ;;  %v4519_v27 = vld [vmem:[#allocation3 + $0x80] ss:$16 sps:$4 sm:$0xff]   ;;  %v4521_v28 = vld [vmem:[#allocation3 + $0xa4] ss:$16 sps:$4 sm:$0xff]   ;;  %v4525_v29 = vld [vmem:[#allocation3 + $0x2c] ss:$16 sps:$4 sm:$0xff]  }
  0x3f   :  { %v4528_v30 = vld [vmem:[#allocation3 + $0x28] ss:$16 sps:$4 sm:$0xff]   ;;  %v4530_v31 = vld [vmem:[#allocation3 + $0xa0] ss:$16 sps:$4 sm:$0xff]   ;;  %v4534_v32 = vld [vmem:[#allocation3 + $0xc4] ss:$16 sps:$4 sm:$0xff]  }
  0x40   :  { %3508 = vmatmul.mubr.msk.bf16.vlgmr.msra.gmra.mrb[0].mxu1 %vm136_vm1, %v77_v14  ;;  %v4538_v33 = vld [vmem:[#allocation3 + $0x4c] ss:$16 sps:$4 sm:$0xff]   ;;  %v4541_v34 = vld [vmem:[#allocation3 + $0x48] ss:$16 sps:$4 sm:$0xff]   ;;  %v4545_v35 = vld [vmem:[#allocation3 + $0xc0] ss:$16 sps:$4 sm:$0xff]  }
  0x41   :  { %197 = vmatpush1.bf16.msra.mxu1 %v3861_v15  ;;  %436 = vmatpush1.bf16.msra.mxu0 %v4499_v18  ;;  %v4549_v36 = vld [vmem:[#allocation3 + $0xe4] ss:$16 sps:$4 sm:$0xff]   ;;  %v4551_v37 = vld [vmem:[#allocation3 + $0x6c] ss:$16 sps:$4 sm:$0xff]   ;;  %v4553_v38 = vld [vmem:[#allocation3 + $0x68] ss:$16 sps:$4 sm:$0xff]  }
  0x42   :  { %3509 = vmatprep.subr.msk.bf16.mxu1 %vm140_vm0, %v3506_v19  ;;  %437 = vmatprep.subr.bf16.mxu0 %v4502_v20  ;;  %v4555_v39 = vld [vmem:[#allocation3 + $0xe0] ss:$16 sps:$4 sm:$0xff]   ;;  %v4557_v40 = vld [vmem:[#allocation3 + $0x8c] ss:$16 sps:$4 sm:$0xff]   ;;  %v4563_v41 = vld [vmem:[#allocation3 + $0x88] ss:$16 sps:$4 sm:$0xff]  }
  0x43   :  { %228 = vmatprep.mubr.bf16.mxu1 %v4351_v0  ;;  %v4565_v42 = vld [vmem:[#allocation3 + $0xac] ss:$16 sps:$4 sm:$0xff]   ;;  %v4571_v43 = vld [vmem:[#allocation3 + $0xa8] ss:$16 sps:$4 sm:$0xff]   ;;  %v84_v51 = vld [vmem:[%s5285_s3] sm:$0xf] }
  0x44   :  { %v4574_v44 = vld [vmem:[#allocation3 + $0xcc] ss:$16 sps:$4 sm:$0xff]   ;;  %v4580_v45 = vld [vmem:[#allocation3 + $0xc8] ss:$16 sps:$4 sm:$0xff]   ;;  %v89_v53 = vrot.slane %v84_v51, %v88_v50  ;;  %v93_v56 = vrot.slane %v84_v51, %v92_v52  ;;  %v100_v62 = vsub.s32 3, %v4625_v49  ;;  %v97_v63 = vrot.slane %v84_v51, %v96_v60  ;;  %s4354_s13 = smov [#allocation9]  }
  0x45   :  { %199 = vmatpush1.bf16.msra.mxu1 %v148_v24  ;;  %438 = vmatpush1.bf16.msra.mxu0 %v4505_v22  ;;  %v4583_v46 = vld [vmem:[#allocation3 + $0xec] ss:$16 sps:$4 sm:$0xff]   ;;  %v4589_v47 = vld [vmem:[#allocation3 + $0xe8] ss:$16 sps:$4 sm:$0xff]   ;;  %vm4353_vm2 = vmmov 0   ;;  %s3489_s4 = sshll.u32 %s4354_s13, 4  ;;  %s3490_s4 = int_to_ptr.vmem [resolvable:$true] %s3489_s4 }
  0x46   :  { %439 = vmatprep.subr.bf16.mxu0 %v4508_v23  ;;  %472 = vmatprep.subr.bf16.mxu1 %v4513_v25  ;;  %v101_v5 = vrot.slane %v84_v51, %v100_v62  ;;  %vm3481_vm3 = vcmask 91136   ;;  %s4318_s10 = scalar_lea.vmem %s3490_s4, 32  ;;  %p4323_p11 = scmp.lt.s32.totalorder %s3490_s4, %s3490_s4 }
  0x47   :  { %p4319_p10 = scmp.ne.s32.totalorder %s3490_s4, %s4318_s10  ;;  %p4324_p12 = scmp.lt.s32.totalorder %s4318_s10, %s4318_s10 }
  0x48   :  { %3510 = vmatmul.mubr.msk.bf16.vlgmr.msra.gmra.mrb[4].mxu1 %vm136_vm1, %v77_v14 }
  0x49   :  { %440 = vmatpush1.bf16.msra.mxu0 %v4519_v27  ;;  %473 = vmatpush1.bf16.msra.mxu1 %v4516_v26  ;;  %p4325_p13 = por %p4324_p12, %p4323_p11 }
  0x4a   :  { %441 = vmatprep.subr.bf16.mxu0 %v4521_v28  ;;  %474 = vmatprep.subr.bf16.mxu1 %v4525_v29 }
  0x4b   :  { %504 = vmatprep.mubr.bf16.mxu1 %v4351_v0  ;;  %p4326_p0 = pnand %p4325_p13, %p4319_p10 }
  0x4d   :  { %442 = vmatpush1.bf16.msra.mxu0 %v4530_v31  ;;  %475 = vmatpush1.bf16.msra.mxu1 %v4528_v30 }
  0x4e   :  { %443 = vmatprep.subr.bf16.mxu0 %v4534_v32  ;;  %476 = vmatprep.subr.bf16.mxu1 %v4538_v33 }
  0x51   :  { %444 = vmatpush1.bf16.msra.mxu0 %v4545_v35  ;;  %477 = vmatpush1.bf16.msra.mxu1 %v4541_v34 }
  0x52   :  { %445 = vmatprep.subr.bf16.mxu0 %v4549_v36  ;;  %478 = vmatprep.subr.bf16.mxu1 %v4551_v37 }
  0x55   :  { %446 = vmatpush1.bf16.msra.mxu0 %v4555_v39  ;;  %479 = vmatpush1.bf16.msra.mxu1 %v4553_v38 }
  0x56   :  { %480 = vmatprep.subr.bf16.mxu1 %v4557_v40  ;;  %735 = vmatprep.subr.bf16.mxu0 %v4462_v2 }
  0x58   :  { %464 = vmatmul.mubr.bf16.vlgmr.msra.gmra.mrb[0].mxu0 %v4351_v0 }
  0x59   :  { %481 = vmatpush1.bf16.msra.mxu1 %v4563_v41  ;;  %736 = vmatpush1.bf16.msra.mxu0 %v4467_v4 }
  0x5a   :  { %482 = vmatprep.subr.bf16.mxu1 %v4565_v42  ;;  %737 = vmatprep.subr.bf16.mxu0 %v4473_v7 }
  0x5b   :  { %767 = vmatprep.mubr.bf16.mxu0 %v4351_v0 }
  0x5d   :  { %483 = vmatpush1.bf16.msra.mxu1 %v4571_v43  ;;  %738 = vmatpush1.bf16.msra.mxu0 %v4476_v9 }
  0x5e   :  { %484 = vmatprep.subr.bf16.mxu1 %v4574_v44  ;;  %739 = vmatprep.subr.bf16.mxu0 %v4493_v16 }
  0x61   :  { %485 = vmatpush1.bf16.msra.mxu1 %v4580_v45  ;;  %740 = vmatpush1.bf16.msra.mxu0 %v4499_v18 }
  0x62   :  { %486 = vmatprep.subr.bf16.mxu1 %v4583_v46  ;;  %741 = vmatprep.subr.bf16.mxu0 %v4502_v20 }
  0x65   :  { %487 = vmatpush1.bf16.msra.mxu1 %v4589_v47  ;;  %742 = vmatpush1.bf16.msra.mxu0 %v4505_v22 }
  0x66   :  { %776 = vmatprep.subr.bf16.mxu1 %v4513_v25  ;;  %743 = vmatprep.subr.bf16.mxu0 %v4508_v23 }
  0x68   :  { %505 = vmatmul.mubr.bf16.vlgmr.msra.gmra.mrb[8].mxu1 %v4351_v0 }
  0x69   :  { %777 = vmatpush1.bf16.msra.mxu1 %v4516_v26  ;;  %744 = vmatpush1.bf16.msra.mxu0 %v4519_v27 }
  0x6a   :  { %778 = vmatprep.subr.bf16.mxu1 %v4525_v29  ;;  %745 = vmatprep.subr.bf16.mxu0 %v4521_v28 }
  0x6b   :  { %808 = vmatprep.mubr.bf16.mxu1 %v4351_v0 }
  0x6d   :  { %779 = vmatpush1.bf16.msra.mxu1 %v4528_v30  ;;  %746 = vmatpush1.bf16.msra.mxu0 %v4530_v31 }
  0x6e   :  { %780 = vmatprep.subr.bf16.mxu1 %v4538_v33  ;;  %747 = vmatprep.subr.bf16.mxu0 %v4534_v32 }
  0x71   :  { %781 = vmatpush1.bf16.msra.mxu1 %v4541_v34  ;;  %748 = vmatpush1.bf16.msra.mxu0 %v4545_v35 }
  0x72   :  { %782 = vmatprep.subr.bf16.mxu1 %v4551_v37  ;;  %749 = vmatprep.subr.bf16.mxu0 %v4549_v36 }
  0x75   :  { %783 = vmatpush1.bf16.msra.mxu1 %v4553_v38  ;;  %750 = vmatpush1.bf16.msra.mxu0 %v4555_v39 }
  0x76   :  { %784 = vmatprep.subr.bf16.mxu1 %v4557_v40  ;;  %1057 = vmatprep.subr.bf16.mxu0 %v4462_v2 }
  0x79   :  { %785 = vmatpush1.bf16.msra.mxu1 %v4563_v41 }
  0x7a   :  { %786 = vmatprep.subr.bf16.mxu1 %v4565_v42 }
  0x7d   :  { %787 = vmatpush1.bf16.msra.mxu1 %v4571_v43 }
  0x7e   :  { %788 = vmatprep.subr.bf16.mxu1 %v4574_v44 }
  0x81   :  { %789 = vmatpush1.bf16.msra.mxu1 %v4580_v45 }
  0x82   :  { %790 = vmatprep.subr.bf16.mxu1 %v4583_v46 }
  0x85   :  { %791 = vmatpush1.bf16.msra.mxu1 %v4589_v47 }
  0x86   :  { %1098 = vmatprep.subr.bf16.mxu1 %v4513_v25 }
 0x113   :  { %v187_v54 = vpop.f32.mrb[0].mxu1 }
 0x114   :  { %v189_v55 = vpop.f32.mrb[1].mxu1  ;;  %v4650_v12 = vadd.f32 %v187_v54, %v89_v53 }
 0x115   :  { %v191_v57 = vpop.f32.mrb[2].mxu1  ;;  %v4652_v13 = vadd.f32 %v189_v55, %v93_v56 }
 0x116   :  { %v4636_v58 = vadd.f32 %v191_v57, %v89_v53  ;;  %v193_v59 = vpop.f32.mrb[3].mxu1 }
 0x117   :  { %v4639_v61 = vadd.f32 %v193_v59, %v93_v56 }
 0x11b   :  { %v230_v1 = vpop.f32.mrb[4].mxu1 }
 0x11c   :  { %v232_v3 = vpop.f32.mrb[5].mxu1  ;;  %v4656_v59 = vadd.f32 %v230_v1, %v97_v63 }
 0x11d   :  { %v234_v6 = vpop.f32.mrb[6].mxu1  ;;  %v4658_v53 = vadd.f32 %v232_v3, %v101_v5 }
 0x11e   :  { %v4646_v8 = vadd.f32 %v234_v6, %v97_v63  ;;  %v236_v10 = vpop.f32.mrb[7].mxu1 }
 0x11f   :  { %v4648_v11 = vadd.f32 %v236_v10, %v101_v5 }
 0x12b   :  { %v465_v14 = vpop.f32.mrb[0].mxu0 }
 0x12c   :  { %v513_v15 = vadd.f32 %v465_v14, %v4650_v12  ;;  %v467_v17 = vpop.f32.mrb[1].mxu0 }
 0x12d   :  { %v514_v19 = vadd.f32 %v467_v17, %v4652_v13  ;;  %v469_v21 = vpop.f32.mrb[2].mxu0 }
 0x12e   :  { %v3543_v24 = vmul.f32 -1.442695, %v513_v15  ;;  %v470_v48 = vpop.f32.mrb[3].mxu0 }
 0x12f   :  { %v3544_v51 = vmul.f32 -1.442695, %v514_v19 }
 0x130   :  { %4060 = vpow2.f32 %v3543_v24 }
 0x131   :  { %4062 = vpow2.f32 %v3544_v51 }
 0x13a   :  { %v4061_v57 = vpop.eup %4060 }
 0x13b   :  { %v4063_v6 = vpop.eup %4062  ;;  %v520_v54 = vadd.f32 1.0, %v4061_v57  ;;  %v506_v55 = vpop.f32.mrb[8].mxu1 }
 0x13c   :  { %v526_v56 = vadd.f32 1.0, %v4063_v6  ;;  %v515_v10 = vadd.f32 %v506_v55, %v4656_v59  ;;  %v508_v14 = vpop.f32.mrb[9].mxu1 }
 0x13d   :  { %4064 = vrcp.f32 %v520_v54  ;;  %v516_v17 = vadd.f32 %v508_v14, %v4658_v53  ;;  %v510_v15 = vpop.f32.mrb[10].mxu1 }
 0x13e   :  { %4066 = vrcp.f32 %v526_v56  ;;  %v3545_v19 = vmul.f32 -1.442695, %v515_v10  ;;  %v511_v21 = vpop.f32.mrb[11].mxu1 }
 0x13f   :  { %4068 = vtanh.f32 %v516_v17 }
 0x140   :  { %4070 = vpow2.f32 %v3545_v19 }
 0x147   :  { %v4065_v63 = vpop.eup %4064 }
 0x148   :  { %v4067_v1 = vpop.eup %4066 }
 0x149   :  { %v4069_v24 = vpop.eup %4068  ;;  %v536_v3 = vmul.f32 0.0, %v4067_v1 }
 0x14a   :  { %v4071_v5 = vpop.eup %4070  ;;  %v537_v48 = vmul.f32 %v4069_v24, %v4065_v63 }
 0x14b   :  { %v532_v51 = vadd.f32 1.0, %v4071_v5 }
 0x14c   :  { %v4662_v57 = vadd.f32 %v537_v48, %v536_v3 }
 0x14d   :  { %4072 = vrcp.f32 %v532_v51 }
 0x14e   :  { %4074 = vtanh.f32 %v4662_v57 }
 0x157   :  { %v4073_v6 = vpop.eup %4072 }
 0x158   :  { %v4075_v54 = vpop.eup %4074 }
 0x159   :  { %v540_v55 = vmul.f32 %v4075_v54, %v4073_v6 }
 0x15b   :  { %541 = vst [vmem:[#allocation2] sm:$0x3] %v540_v55  ;;  %v542_v56 = vpack.c.bf16 %v540_v55, %v540_v55 }
 0x15d   :  { %768 = vmatmul.mubr.bf16.vlgmr.msra.gmra.mrb[4].mxu0 %v542_v56  ;;  %809 = vmatmul.mubr.bf16.vlgmr.msra.gmra.mrb[12].mxu1 %v542_v56 }
 0x15e   :  { %1058 = vmatpush1.bf16.msra.mxu0 %v4467_v4  ;;  %1099 = vmatpush1.bf16.msra.mxu1 %v4516_v26 }
 0x15f   :  { %1059 = vmatprep.subr.bf16.mxu0 %v4473_v7  ;;  %1100 = vmatprep.subr.bf16.mxu1 %v4525_v29 }
 0x160   :  { %1089 = vmatprep.mubr.bf16.mxu0 %v4351_v0  ;;  %1130 = vmatprep.mubr.bf16.mxu1 %v4351_v0 }
 0x162   :  { %1060 = vmatpush1.bf16.msra.mxu0 %v4476_v9  ;;  %1101 = vmatpush1.bf16.msra.mxu1 %v4528_v30 }
 0x163   :  { %1061 = vmatprep.subr.bf16.mxu0 %v4493_v16  ;;  %1102 = vmatprep.subr.bf16.mxu1 %v4538_v33 }
 0x166   :  { %1062 = vmatpush1.bf16.msra.mxu0 %v4499_v18  ;;  %1103 = vmatpush1.bf16.msra.mxu1 %v4541_v34 }
 0x167   :  { %1063 = vmatprep.subr.bf16.mxu0 %v4502_v20  ;;  %1104 = vmatprep.subr.bf16.mxu1 %v4551_v37 }
 0x16a   :  { %1064 = vmatpush1.bf16.msra.mxu0 %v4505_v22  ;;  %1105 = vmatpush1.bf16.msra.mxu1 %v4553_v38 }
 0x16b   :  { %1065 = vmatprep.subr.bf16.mxu0 %v4508_v23  ;;  %1106 = vmatprep.subr.bf16.mxu1 %v4557_v40 }
 0x16e   :  { %1066 = vmatpush1.bf16.msra.mxu0 %v4519_v27  ;;  %1107 = vmatpush1.bf16.msra.mxu1 %v4563_v41 }
 0x16f   :  { %1067 = vmatprep.subr.bf16.mxu0 %v4521_v28  ;;  %1108 = vmatprep.subr.bf16.mxu1 %v4565_v42 }
 0x172   :  { %1068 = vmatpush1.bf16.msra.mxu0 %v4530_v31  ;;  %1109 = vmatpush1.bf16.msra.mxu1 %v4571_v43 }
 0x173   :  { %1069 = vmatprep.subr.bf16.mxu0 %v4534_v32  ;;  %1110 = vmatprep.subr.bf16.mxu1 %v4574_v44 }
 0x176   :  { %1070 = vmatpush1.bf16.msra.mxu0 %v4545_v35  ;;  %1111 = vmatpush1.bf16.msra.mxu1 %v4580_v45 }
 0x177   :  { %1071 = vmatprep.subr.bf16.mxu0 %v4549_v36  ;;  %1112 = vmatprep.subr.bf16.mxu1 %v4583_v46 }
 0x17a   :  { %1072 = vmatpush1.bf16.msra.mxu0 %v4555_v39  ;;  %1113 = vmatpush1.bf16.msra.mxu1 %v4589_v47 }
 0x17b   :  { %1379 = vmatprep.subr.bf16.mxu0 %v4462_v2  ;;  %1420 = vmatprep.subr.bf16.mxu1 %v4513_v25 }
 0x230   :  { %v769_v10 = vpop.f32.mrb[4].mxu0  ;;  %v810_v14 = vpop.f32.mrb[12].mxu1 }
 0x231   :  { %v821_v17 = vrot.slane %v769_v10, 6  ;;  %v771_v15 = vpop.f32.mrb[5].mxu0  ;;  %v812_v19 = vpop.f32.mrb[13].mxu1  ;;  %v823_v2 = vrot.slane %v810_v14, 6  ;;  %v853_v14 = vrot.slane %v4662_v57, 6 }
 0x232   :  { %v822_v21 = vrot.slane %v771_v15, 6  ;;  %v773_v63 = vpop.f32.mrb[6].mxu0  ;;  %v814_v1 = vpop.f32.mrb[14].mxu1  ;;  %v824_v25 = vrot.slane %v812_v19, 6 }
 0x233   :  { %v829_v24 = vadd.f32 %v821_v17, %v4650_v12  ;;  %v774_v3 = vpop.f32.mrb[7].mxu0  ;;  %v815_v5 = vpop.f32.mrb[15].mxu1  ;;  %v831_v54 = vadd.f32 %v823_v2, %v4656_v59 }
 0x234   :  { %v830_v48 = vadd.f32 %v822_v21, %v4652_v13  ;;  %v832_v55 = vadd.f32 %v824_v25, %v4658_v53 }
 0x235   :  { %v3578_v51 = vmul.f32 -1.442695, %v829_v24  ;;  %v3580_v56 = vmul.f32 -1.442695, %v831_v54 }
 0x236   :  { %v3579_v6 = vmul.f32 -1.442695, %v830_v48 }
 0x237   :  { %4076 = vpow2.f32 %v3578_v51 }
 0x238   :  { %4078 = vpow2.f32 %v3579_v6 }
 0x239   :  { %4080 = vtanh.f32 %v832_v55 }
 0x23a   :  { %4082 = vpow2.f32 %v3580_v56 }
 0x241   :  { %v4077_v10 = vpop.eup %4076 }
 0x242   :  { %v836_v15 = vadd.f32 1.0, %v4077_v10  ;;  %v4079_v63 = vpop.eup %4078 }
 0x243   :  { %v842_v17 = vadd.f32 1.0, %v4079_v63  ;;  %v4081_v21 = vpop.eup %4080 }
 0x244   :  { %4084 = vrcp.f32 %v836_v15  ;;  %v4083_v1 = vpop.eup %4082 }
 0x245   :  { %4086 = vrcp.f32 %v842_v17  ;;  %v848_v5 = vadd.f32 1.0, %v4083_v1  ;;  %v4749_v1 = vld [vmem:[#allocation3 + $0x4] ss:$16 sps:$4 sm:$0xff]  }
 0x247   :  { %4088 = vrcp.f32 %v848_v5  ;;  %v4763_v5 = vld [vmem:[#allocation3 + $0x2c] ss:$16 sps:$4 sm:$0xff]  }
 0x24e   :  { %v4085_v24 = vpop.eup %4084 }
 0x24f   :  { %v856_v3 = vmul.f32 %v4085_v24, %v4081_v21  ;;  %v4087_v19 = vpop.eup %4086  ;;  %v4751_v24 = vld [vmem:[#allocation3 + $0xc] ss:$16 sps:$4 sm:$0xff]  }
 0x250   :  { %v855_v48 = vmul.f32 %v4087_v19, %v853_v14  ;;  %v4753_v14 = vld [vmem:[#allocation3] ss:$16 sps:$4 sm:$0xff]   ;;  %v4761_v19 = vld [vmem:[#allocation3 + $0x24] ss:$16 sps:$4 sm:$0xff]  }
 0x251   :  { %v4089_v6 = vpop.eup %4088 }
 0x252   :  { %v4704_v51 = vadd.f32 %v856_v3, %v855_v48  ;;  %v4755_v3 = vld [vmem:[#allocation3 + $0x8] ss:$16 sps:$4 sm:$0xff]   ;;  %v4765_v48 = vld [vmem:[#allocation3 + $0x20] ss:$16 sps:$4 sm:$0xff]  }
 0x254   :  { %4090 = vtanh.f32 %v4704_v51 }
 0x25e   :  { %v4091_v2 = vpop.eup %4090 }
 0x25f   :  { %v859_v25 = vmul.f32 %v4091_v2, %v4089_v6  ;;  %v4773_v6 = vld [vmem:[#allocation3 + $0x44] ss:$16 sps:$4 sm:$0xff]   ;;  %v4775_v2 = vld [vmem:[#allocation3 + $0x4c] ss:$16 sps:$4 sm:$0xff]  }
 0x261   :  { %860 = vst [vmem:[#allocation2] sm:$0xc] %v859_v25  ;;  %v861_v54 = vpack.c.bf16 %v859_v25, %v859_v25  ;;  %v4777_v25 = vld [vmem:[#allocation3 + $0x40] ss:$16 sps:$4 sm:$0xff]  }
 0x263   :  { %v895_v55 = vrot.slane %v861_v54, 1  ;;  %v4779_v54 = vld [vmem:[#allocation3 + $0x48] ss:$16 sps:$4 sm:$0xff]  }
 0x265   :  { %1090 = vmatmul.mubr.bf16.vlgmr.msra.gmra.mrb[8].mxu0 %v895_v55  ;;  %1131 = vmatmul.mubr.bf16.vlgmr.msra.gmra.mrb[16].mxu1 %v895_v55  ;;  %v4785_v55 = vld [vmem:[#allocation3 + $0x64] ss:$16 sps:$4 sm:$0xff]  }
 0x266   :  { %1380 = vmatpush1.bf16.msra.mxu0 %v4467_v4  ;;  %1421 = vmatpush1.bf16.msra.mxu1 %v4516_v26 }
 0x267   :  { %1381 = vmatprep.subr.bf16.mxu0 %v4473_v7  ;;  %1422 = vmatprep.subr.bf16.mxu1 %v4525_v29 }
 0x268   :  { %1411 = vmatprep.mubr.bf16.mxu0 %v4351_v0  ;;  %1452 = vmatprep.mubr.bf16.mxu1 %v4351_v0 }
 0x26a   :  { %1382 = vmatpush1.bf16.msra.mxu0 %v4476_v9  ;;  %1423 = vmatpush1.bf16.msra.mxu1 %v4528_v30 }
 0x26b   :  { %1383 = vmatprep.subr.bf16.mxu0 %v4493_v16  ;;  %1424 = vmatprep.subr.bf16.mxu1 %v4538_v33 }
 0x26e   :  { %1384 = vmatpush1.bf16.msra.mxu0 %v4499_v18  ;;  %1425 = vmatpush1.bf16.msra.mxu1 %v4541_v34 }
 0x26f   :  { %1385 = vmatprep.subr.bf16.mxu0 %v4502_v20  ;;  %1426 = vmatprep.subr.bf16.mxu1 %v4551_v37 }
 0x272   :  { %1386 = vmatpush1.bf16.msra.mxu0 %v4505_v22  ;;  %1427 = vmatpush1.bf16.msra.mxu1 %v4553_v38 }
 0x273   :  { %1387 = vmatprep.subr.bf16.mxu0 %v4508_v23  ;;  %1428 = vmatprep.subr.bf16.mxu1 %v4557_v40 }
 0x276   :  { %1388 = vmatpush1.bf16.msra.mxu0 %v4519_v27  ;;  %1429 = vmatpush1.bf16.msra.mxu1 %v4563_v41 }
 0x277   :  { %1389 = vmatprep.subr.bf16.mxu0 %v4521_v28  ;;  %1430 = vmatprep.subr.bf16.mxu1 %v4565_v42 }
 0x27a   :  { %1390 = vmatpush1.bf16.msra.mxu0 %v4530_v31  ;;  %1431 = vmatpush1.bf16.msra.mxu1 %v4571_v43 }
 0x27b   :  { %1391 = vmatprep.subr.bf16.mxu0 %v4534_v32  ;;  %1432 = vmatprep.subr.bf16.mxu1 %v4574_v44  ;;  %v1175_v44 = vrot.slane %v4704_v51, 6  ;;  %v4767_v51 = vld [vmem:[#allocation3 + $0x28] ss:$16 sps:$4 sm:$0xff]  }
 0x27e   :  { %1392 = vmatpush1.bf16.msra.mxu0 %v4545_v35  ;;  %1433 = vmatpush1.bf16.msra.mxu1 %v4580_v45 }
 0x27f   :  { %1393 = vmatprep.subr.bf16.mxu0 %v4549_v36  ;;  %1434 = vmatprep.subr.bf16.mxu1 %v4583_v46 }
 0x282   :  { %1394 = vmatpush1.bf16.msra.mxu0 %v4555_v39  ;;  %1435 = vmatpush1.bf16.msra.mxu1 %v4589_v47 }
 0x283   :  { %1701 = vmatprep.subr.bf16.mxu0 %v4749_v1  ;;  %1742 = vmatprep.subr.bf16.mxu1 %v4751_v24 }
 0x338   :  { %v1091_v4 = vpop.f32.mrb[8].mxu0  ;;  %v1132_v7 = vpop.f32.mrb[16].mxu1 }
 0x339   :  { %v1143_v9 = vrot.slane %v1091_v4, 4  ;;  %v1093_v16 = vpop.f32.mrb[9].mxu0  ;;  %v1134_v18 = vpop.f32.mrb[17].mxu1  ;;  %v1145_v32 = vrot.slane %v1132_v7, 4  ;;  %v4787_v4 = vld [vmem:[#allocation3 + $0x6c] ss:$16 sps:$4 sm:$0xff]  }
 0x33a   :  { %v1144_v20 = vrot.slane %v1093_v16, 4  ;;  %v1095_v22 = vpop.f32.mrb[10].mxu0  ;;  %v1136_v23 = vpop.f32.mrb[18].mxu1  ;;  %v1146_v33 = vrot.slane %v1134_v18, 4  ;;  %v4789_v7 = vld [vmem:[#allocation3 + $0x60] ss:$16 sps:$4 sm:$0xff]  }
 0x33b   :  { %v1151_v26 = vadd.f32 %v1143_v9, %v4650_v12  ;;  %v1096_v27 = vpop.f32.mrb[11].mxu0  ;;  %v1137_v28 = vpop.f32.mrb[19].mxu1  ;;  %v1153_v34 = vadd.f32 %v1145_v32, %v4656_v59  ;;  %v4791_v9 = vld [vmem:[#allocation3 + $0x68] ss:$16 sps:$4 sm:$0xff]   ;;  %v4797_v16 = vld [vmem:[#allocation3 + $0x84] ss:$16 sps:$4 sm:$0xff]  }
 0x33c   :  { %v1152_v29 = vadd.f32 %v1144_v20, %v4652_v13  ;;  %v1154_v35 = vadd.f32 %v1146_v33, %v4658_v53  ;;  %v4799_v18 = vld [vmem:[#allocation3 + $0x8c] ss:$16 sps:$4 sm:$0xff]   ;;  %v4801_v20 = vld [vmem:[#allocation3 + $0x80] ss:$16 sps:$4 sm:$0xff]   ;;  %v4803_v22 = vld [vmem:[#allocation3 + $0x88] ss:$16 sps:$4 sm:$0xff]  }
 0x33d   :  { %v3613_v30 = vmul.f32 -1.442695, %v1151_v26  ;;  %v3615_v36 = vmul.f32 -1.442695, %v1153_v34  ;;  %v4807_v23 = vld [vmem:[#allocation3 + $0xa4] ss:$16 sps:$4 sm:$0xff]  }
 0x33e   :  { %v3614_v31 = vmul.f32 -1.442695, %v1152_v29  ;;  %v4809_v26 = vld [vmem:[#allocation3 + $0xac] ss:$16 sps:$4 sm:$0xff]   ;;  %v4813_v27 = vld [vmem:[#allocation3 + $0xa0] ss:$16 sps:$4 sm:$0xff]  }
 0x33f   :  { %4092 = vpow2.f32 %v3613_v30  ;;  %v4815_v28 = vld [vmem:[#allocation3 + $0xa8] ss:$16 sps:$4 sm:$0xff]   ;;  %v4819_v29 = vld [vmem:[#allocation3 + $0xc4] ss:$16 sps:$4 sm:$0xff]   ;;  %v4821_v30 = vld [vmem:[#allocation3 + $0xcc] ss:$16 sps:$4 sm:$0xff]  }
 0x340   :  { %4094 = vpow2.f32 %v3614_v31  ;;  %v4825_v31 = vld [vmem:[#allocation3 + $0xc0] ss:$16 sps:$4 sm:$0xff]   ;;  %v4827_v32 = vld [vmem:[#allocation3 + $0xc8] ss:$16 sps:$4 sm:$0xff]   ;;  %v4831_v33 = vld [vmem:[#allocation3 + $0xe4] ss:$16 sps:$4 sm:$0xff]  }
 0x341   :  { %4096 = vtanh.f32 %v1154_v35  ;;  %v4833_v34 = vld [vmem:[#allocation3 + $0xec] ss:$16 sps:$4 sm:$0xff]   ;;  %v4837_v35 = vld [vmem:[#allocation3 + $0xe0] ss:$16 sps:$4 sm:$0xff]  }
 0x342   :  { %4098 = vpow2.f32 %v3615_v36  ;;  %v4839_v36 = vld [vmem:[#allocation3 + $0xe8] ss:$16 sps:$4 sm:$0xff]  }
 0x349   :  { %v4093_v37 = vpop.eup %4092 }
 0x34a   :  { %v1158_v38 = vadd.f32 1.0, %v4093_v37  ;;  %v4095_v39 = vpop.eup %4094 }
 0x34b   :  { %v1164_v40 = vadd.f32 1.0, %v4095_v39  ;;  %v4097_v41 = vpop.eup %4096 }
 0x34c   :  { %4100 = vrcp.f32 %v1158_v38  ;;  %v4099_v42 = vpop.eup %4098 }
 0x34d   :  { %4102 = vrcp.f32 %v1164_v40  ;;  %v1170_v47 = vadd.f32 1.0, %v4099_v42 }
 0x34f   :  { %4104 = vrcp.f32 %v1170_v47 }
 0x356   :  { %v4101_v43 = vpop.eup %4100 }
 0x357   :  { %v1178_v45 = vmul.f32 %v4101_v43, %v4097_v41  ;;  %v4103_v46 = vpop.eup %4102 }
 0x358   :  { %v1177_v57 = vmul.f32 %v4103_v46, %v1175_v44 }
 0x359   :  { %v4105_v10 = vpop.eup %4104 }
 0x35a   :  { %v4744_v56 = vadd.f32 %v1178_v45, %v1177_v57 }
 0x35c   :  { %4106 = vtanh.f32 %v4744_v56 }
 0x366   :  { %v4107_v15 = vpop.eup %4106 }
 0x367   :  { %v1181_v63 = vmul.f32 %v4107_v15, %v4105_v10 }
 0x369   :  { %1182 = vst [vmem:[#allocation2] sm:$0x30] %v1181_v63  ;;  %v1183_v17 = vpack.c.bf16 %v1181_v63, %v1181_v63 }
 0x36b   :  { %v1217_v21 = vrot.slane %v1183_v17, 2 }
 0x36d   :  { %1412 = vmatmul.mubr.bf16.vlgmr.msra.gmra.mrb[12].mxu0 %v1217_v21  ;;  %1453 = vmatmul.mubr.bf16.vlgmr.msra.gmra.mrb[20].mxu1 %v1217_v21 }
 0x36e   :  { %1733 = vmatprep.mubr.bf16.mxu0 %v4351_v0  ;;  %1774 = vmatprep.mubr.bf16.mxu1 %v4351_v0 }
 0x36f   :  { %1702 = vmatpush1.bf16.msra.mxu0 %v4753_v14  ;;  %1743 = vmatpush1.bf16.msra.mxu1 %v4755_v3 }
 0x370   :  { %1703 = vmatprep.subr.bf16.mxu0 %v4761_v19  ;;  %1744 = vmatprep.subr.bf16.mxu1 %v4763_v5 }
 0x373   :  { %1704 = vmatpush1.bf16.msra.mxu0 %v4765_v48  ;;  %1745 = vmatpush1.bf16.msra.mxu1 %v4767_v51 }
 0x374   :  { %1705 = vmatprep.subr.bf16.mxu0 %v4773_v6  ;;  %1746 = vmatprep.subr.bf16.mxu1 %v4775_v2 }
 0x377   :  { %1706 = vmatpush1.bf16.msra.mxu0 %v4777_v25  ;;  %1747 = vmatpush1.bf16.msra.mxu1 %v4779_v54 }
 0x378   :  { %1707 = vmatprep.subr.bf16.mxu0 %v4785_v55  ;;  %1748 = vmatprep.subr.bf16.mxu1 %v4787_v4 }
 0x37b   :  { %1708 = vmatpush1.bf16.msra.mxu0 %v4789_v7  ;;  %1749 = vmatpush1.bf16.msra.mxu1 %v4791_v9 }
 0x37c   :  { %1709 = vmatprep.subr.bf16.mxu0 %v4797_v16  ;;  %1750 = vmatprep.subr.bf16.mxu1 %v4799_v18 }
 0x37f   :  { %1710 = vmatpush1.bf16.msra.mxu0 %v4801_v20  ;;  %1751 = vmatpush1.bf16.msra.mxu1 %v4803_v22 }
 0x380   :  { %1711 = vmatprep.subr.bf16.mxu0 %v4807_v23  ;;  %1752 = vmatprep.subr.bf16.mxu1 %v4809_v26 }
 0x383   :  { %1712 = vmatpush1.bf16.msra.mxu0 %v4813_v27  ;;  %1753 = vmatpush1.bf16.msra.mxu1 %v4815_v28 }
 0x384   :  { %1713 = vmatprep.subr.bf16.mxu0 %v4819_v29  ;;  %1754 = vmatprep.subr.bf16.mxu1 %v4821_v30 }
 0x387   :  { %1714 = vmatpush1.bf16.msra.mxu0 %v4825_v31  ;;  %1755 = vmatpush1.bf16.msra.mxu1 %v4827_v32 }
 0x388   :  { %1715 = vmatprep.subr.bf16.mxu0 %v4831_v33  ;;  %1756 = vmatprep.subr.bf16.mxu1 %v4833_v34 }
 0x38b   :  { %1716 = vmatpush1.bf16.msra.mxu0 %v4837_v35  ;;  %1757 = vmatpush1.bf16.msra.mxu1 %v4839_v36 }
 0x38c   :  { %2008 = vmatprep.subr.bf16.mxu0 %v4749_v1  ;;  %2049 = vmatprep.subr.bf16.mxu1 %v4751_v24 }
 0x440   :  { %v1413_v37 = vpop.f32.mrb[12].mxu0  ;;  %v1454_v38 = vpop.f32.mrb[20].mxu1 }
 0x441   :  { %v1465_v39 = vrot.slane %v1413_v37, 2  ;;  %v1415_v40 = vpop.f32.mrb[13].mxu0  ;;  %v1456_v41 = vpop.f32.mrb[21].mxu1  ;;  %v1467_v63 = vrot.slane %v1454_v38, 2  ;;  %v1497_v38 = vrot.slane %v4744_v56, 6 }
 0x442   :  { %v1466_v42 = vrot.slane %v1415_v40, 2  ;;  %v1417_v43 = vpop.f32.mrb[14].mxu0  ;;  %v1458_v44 = vpop.f32.mrb[22].mxu1  ;;  %v1468_v17 = vrot.slane %v1456_v41, 2 }
 0x443   :  { %v1473_v45 = vadd.f32 %v1465_v39, %v4650_v12  ;;  %v1418_v46 = vpop.f32.mrb[15].mxu0  ;;  %v1459_v47 = vpop.f32.mrb[23].mxu1  ;;  %v1475_v21 = vadd.f32 %v1467_v63, %v4656_v59 }
 0x444   :  { %v1474_v57 = vadd.f32 %v1466_v42, %v4652_v13  ;;  %v1476_v1 = vadd.f32 %v1468_v17, %v4658_v53  ;;  %v3958_v17 = vld [vmem:[#allocation6 + $0x4] ss:$16 sps:$4 sm:$0xff]  }
 0x445   :  { %v3648_v10 = vmul.f32 -1.442695, %v1473_v45  ;;  %v3650_v24 = vmul.f32 -1.442695, %v1475_v21  ;;  %v3961_v21 = vld [vmem:[#allocation6 + $0xc] ss:$16 sps:$4 sm:$0xff]  }
 0x446   :  { %v3649_v15 = vmul.f32 -1.442695, %v1474_v57 }
 0x447   :  { %4108 = vpow2.f32 %v3648_v10 }
 0x448   :  { %4110 = vpow2.f32 %v3649_v15 }
 0x449   :  { %4112 = vtanh.f32 %v1476_v1  ;;  %v3956_v1 = vld [vmem:[#allocation6] ss:$16 sps:$4 sm:$0xff]  }
 0x44a   :  { %4114 = vpow2.f32 %v3650_v24  ;;  %v3959_v24 = vld [vmem:[#allocation6 + $0x8] ss:$16 sps:$4 sm:$0xff]  }
 0x451   :  { %v4109_v37 = vpop.eup %4108 }
 0x452   :  { %v1480_v40 = vadd.f32 1.0, %v4109_v37  ;;  %v4111_v43 = vpop.eup %4110  ;;  %v3964_v37 = vld [vmem:[#allocation6 + $0x24] ss:$16 sps:$4 sm:$0xff]  }
 0x453   :  { %v1486_v12 = vadd.f32 1.0, %v4111_v43  ;;  %v4113_v13 = vpop.eup %4112  ;;  %v3962_v43 = vld [vmem:[#allocation6 + $0x20] ss:$16 sps:$4 sm:$0xff]  }
 0x454   :  { %4116 = vrcp.f32 %v1480_v40  ;;  %v4115_v39 = vpop.eup %4114  ;;  %v3967_v40 = vld [vmem:[#allocation6 + $0x2c] ss:$16 sps:$4 sm:$0xff]  }
 0x455   :  { %4118 = vrcp.f32 %v1486_v12  ;;  %v1492_v45 = vadd.f32 1.0, %v4115_v39  ;;  %v3965_v12 = vld [vmem:[#allocation6 + $0x28] ss:$16 sps:$4 sm:$0xff]   ;;  %v3973_v39 = vld [vmem:[#allocation6 + $0x4c] ss:$16 sps:$4 sm:$0xff]  }
 0x457   :  { %4120 = vrcp.f32 %v1492_v45  ;;  %v3974_v45 = vld [vmem:[#allocation6 + $0x60] ss:$16 sps:$4 sm:$0xff]  }
 0x45e   :  { %v4117_v42 = vpop.eup %4116 }
 0x45f   :  { %v1500_v44 = vmul.f32 %v4117_v42, %v4113_v13  ;;  %v4119_v41 = vpop.eup %4118  ;;  %v3970_v13 = vld [vmem:[#allocation6 + $0x44] ss:$16 sps:$4 sm:$0xff]   ;;  %v3968_v42 = vld [vmem:[#allocation6 + $0x40] ss:$16 sps:$4 sm:$0xff]  }
 0x460   :  { %v1499_v59 = vmul.f32 %v4119_v41, %v1497_v38  ;;  %v3971_v38 = vld [vmem:[#allocation6 + $0x48] ss:$16 sps:$4 sm:$0xff]   ;;  %v3979_v41 = vld [vmem:[#allocation6 + $0x6c] ss:$16 sps:$4 sm:$0xff]  }
 0x461   :  { %v4121_v53 = vpop.eup %4120 }
 0x462   :  { %v4852_v46 = vadd.f32 %v1500_v44, %v1499_v59  ;;  %v3976_v44 = vld [vmem:[#allocation6 + $0x64] ss:$16 sps:$4 sm:$0xff]   ;;  %v3977_v59 = vld [vmem:[#allocation6 + $0x68] ss:$16 sps:$4 sm:$0xff]  }
 0x464   :  { %4122 = vtanh.f32 %v4852_v46 }
 0x46e   :  { %v4123_v47 = vpop.eup %4122 }
 0x46f   :  { %v1503_v57 = vmul.f32 %v4123_v47, %v4121_v53  ;;  %v3985_v53 = vld [vmem:[#allocation6 + $0x8c] ss:$16 sps:$4 sm:$0xff]   ;;  %v3980_v47 = vld [vmem:[#allocation6 + $0x80] ss:$16 sps:$4 sm:$0xff]  }
 0x471   :  { %1504 = vst [vmem:[#allocation2] sm:$0xc0] %v1503_v57  ;;  %v1505_v10 = vpack.c.bf16 %v1503_v57, %v1503_v57  ;;  %v3983_v57 = vld [vmem:[#allocation6 + $0x88] ss:$16 sps:$4 sm:$0xff]  }
 0x473   :  { %v1539_v15 = vrot.slane %v1505_v10, 3  ;;  %v3988_v10 = vld [vmem:[#allocation6 + $0xa4] ss:$16 sps:$4 sm:$0xff]  }
 0x475   :  { %1734 = vmatmul.mubr.bf16.vlgmr.msra.gmra.mrb[16].mxu0 %v1539_v15  ;;  %1775 = vmatmul.mubr.bf16.vlgmr.msra.gmra.mrb[24].mxu1 %v1539_v15  ;;  %v3991_v15 = vld [vmem:[#allocation6 + $0xac] ss:$16 sps:$4 sm:$0xff]  }
 0x476   :  { %2009 = vmatpush1.bf16.msra.mxu0 %v4753_v14  ;;  %2050 = vmatpush1.bf16.msra.mxu1 %v4755_v3 }
 0x477   :  { %2010 = vmatprep.subr.bf16.mxu0 %v4761_v19  ;;  %2051 = vmatprep.subr.bf16.mxu1 %v4763_v5 }
 0x478   :  { %2040 = vmatprep.mubr.bf16.mxu0 %v4351_v0  ;;  %2081 = vmatprep.mubr.bf16.mxu1 %v4351_v0 }
 0x47a   :  { %2011 = vmatpush1.bf16.msra.mxu0 %v4765_v48  ;;  %2052 = vmatpush1.bf16.msra.mxu1 %v4767_v51 }
 0x47b   :  { %2012 = vmatprep.subr.bf16.mxu0 %v4773_v6  ;;  %2053 = vmatprep.subr.bf16.mxu1 %v4775_v2 }
 0x47e   :  { %2013 = vmatpush1.bf16.msra.mxu0 %v4777_v25  ;;  %2054 = vmatpush1.bf16.msra.mxu1 %v4779_v54 }
 0x47f   :  { %2014 = vmatprep.subr.bf16.mxu0 %v4785_v55  ;;  %2055 = vmatprep.subr.bf16.mxu1 %v4787_v4 }
 0x482   :  { %2015 = vmatpush1.bf16.msra.mxu0 %v4789_v7  ;;  %2056 = vmatpush1.bf16.msra.mxu1 %v4791_v9 }
 0x483   :  { %2016 = vmatprep.subr.bf16.mxu0 %v4797_v16  ;;  %2057 = vmatprep.subr.bf16.mxu1 %v4799_v18 }
 0x486   :  { %2017 = vmatpush1.bf16.msra.mxu0 %v4801_v20  ;;  %2058 = vmatpush1.bf16.msra.mxu1 %v4803_v22 }
 0x487   :  { %2018 = vmatprep.subr.bf16.mxu0 %v4807_v23  ;;  %2059 = vmatprep.subr.bf16.mxu1 %v4809_v26 }
 0x48a   :  { %2019 = vmatpush1.bf16.msra.mxu0 %v4813_v27  ;;  %2060 = vmatpush1.bf16.msra.mxu1 %v4815_v28  ;;  %v1807_v28 = vrot.slane %v4852_v46, 6  ;;  %v3982_v46 = vld [vmem:[#allocation6 + $0x84] ss:$16 sps:$4 sm:$0xff]  }
 0x48b   :  { %2020 = vmatprep.subr.bf16.mxu0 %v4819_v29  ;;  %2061 = vmatprep.subr.bf16.mxu1 %v4821_v30 }
 0x48e   :  { %2021 = vmatpush1.bf16.msra.mxu0 %v4825_v31  ;;  %2062 = vmatpush1.bf16.msra.mxu1 %v4827_v32 }
 0x48f   :  { %2022 = vmatprep.subr.bf16.mxu0 %v4831_v33  ;;  %2063 = vmatprep.subr.bf16.mxu1 %v4833_v34 }
 0x492   :  { %2023 = vmatpush1.bf16.msra.mxu0 %v4837_v35  ;;  %2064 = vmatpush1.bf16.msra.mxu1 %v4839_v36 }
 0x493   :  { %2351 = vmatprep.subr.bf16.mxu0 %v3958_v17  ;;  %2394 = vmatprep.subr.bf16.mxu1 %v3961_v21 }
 0x548   :  { %v1735_v56 = vpop.f32.mrb[16].mxu0  ;;  %v1776_v14 = vpop.f32.mrb[24].mxu1 }
 0x549   :  { %v1783_v3 = vadd.f32 %v1735_v56, %v4636_v58  ;;  %v1737_v19 = vpop.f32.mrb[17].mxu0  ;;  %v1778_v5 = vpop.f32.mrb[25].mxu1  ;;  %v1785_v4 = vadd.f32 %v1776_v14, %v4646_v8  ;;  %v3986_v56 = vld [vmem:[#allocation6 + $0xa0] ss:$16 sps:$4 sm:$0xff]   ;;  %v3989_v14 = vld [vmem:[#allocation6 + $0xa8] ss:$16 sps:$4 sm:$0xff]  }
 0x54a   :  { %v1784_v48 = vadd.f32 %v1737_v19, %v4639_v61  ;;  %v1739_v51 = vpop.f32.mrb[18].mxu0  ;;  %v1780_v6 = vpop.f32.mrb[26].mxu1  ;;  %v1786_v7 = vadd.f32 %v1778_v5, %v4648_v11  ;;  %v3997_v19 = vld [vmem:[#allocation6 + $0xcc] ss:$16 sps:$4 sm:$0xff]   ;;  %v3992_v5 = vld [vmem:[#allocation6 + $0xc0] ss:$16 sps:$4 sm:$0xff]  }
 0x54b   :  { %v3683_v2 = vmul.f32 -1.442695, %v1783_v3  ;;  %v1740_v25 = vpop.f32.mrb[19].mxu0  ;;  %v1781_v54 = vpop.f32.mrb[27].mxu1  ;;  %v3685_v9 = vmul.f32 -1.442695, %v1785_v4 }
 0x54c   :  { %v3684_v55 = vmul.f32 -1.442695, %v1784_v48  ;;  %v3994_v3 = vld [vmem:[#allocation6 + $0xc4] ss:$16 sps:$4 sm:$0xff]   ;;  %v3995_v48 = vld [vmem:[#allocation6 + $0xc8] ss:$16 sps:$4 sm:$0xff]  }
 0x54d   :  { %4124 = vpow2.f32 %v3683_v2  ;;  %v4000_v51 = vld [vmem:[#allocation6 + $0xe4] ss:$16 sps:$4 sm:$0xff]   ;;  %v4003_v6 = vld [vmem:[#allocation6 + $0xec] ss:$16 sps:$4 sm:$0xff]   ;;  %v3998_v2 = vld [vmem:[#allocation6 + $0xe0] ss:$16 sps:$4 sm:$0xff]  }
 0x54e   :  { %4126 = vpow2.f32 %v3684_v55  ;;  %v4001_v25 = vld [vmem:[#allocation6 + $0xe8] ss:$16 sps:$4 sm:$0xff]   ;;  %v4897_v54 = vld [vmem:[#allocation8 + $0x4] ss:$16 sps:$4 sm:$0xff]   ;;  %v4899_v55 = vld [vmem:[#allocation8 + $0xc] ss:$16 sps:$4 sm:$0xff]  }
 0x54f   :  { %4128 = vtanh.f32 %v1786_v7 }
 0x550   :  { %4130 = vpow2.f32 %v3685_v9 }
 0x557   :  { %v4125_v16 = vpop.eup %4124 }
 0x558   :  { %v1790_v18 = vadd.f32 1.0, %v4125_v16  ;;  %v4127_v20 = vpop.eup %4126 }
 0x559   :  { %v1796_v22 = vadd.f32 1.0, %v4127_v20  ;;  %v4129_v23 = vpop.eup %4128 }
 0x55a   :  { %4132 = vrcp.f32 %v1790_v18  ;;  %v4131_v26 = vpop.eup %4130 }
 0x55b   :  { %4134 = vrcp.f32 %v1796_v22  ;;  %v1802_v31 = vadd.f32 1.0, %v4131_v26 }
 0x55d   :  { %4136 = vrcp.f32 %v1802_v31 }
 0x564   :  { %v4133_v27 = vpop.eup %4132 }
 0x565   :  { %v1810_v29 = vmul.f32 %v4133_v27, %v4129_v23  ;;  %v4135_v30 = vpop.eup %4134 }
 0x566   :  { %v1809_v32 = vmul.f32 %v4135_v30, %v1807_v28 }
 0x567   :  { %v4137_v34 = vpop.eup %4136 }
 0x568   :  { %v4892_v33 = vadd.f32 %v1810_v29, %v1809_v32 }
 0x56a   :  { %4138 = vtanh.f32 %v4892_v33 }
 0x574   :  { %v4139_v35 = vpop.eup %4138 }
 0x575   :  { %v1813_v36 = vmul.f32 %v4139_v35, %v4137_v34 }
 0x577   :  { %1814 = vst [vmem:[#allocation2 + $0x8] sm:$0x3] %v1813_v36  ;;  %v1815_v63 = vpack.c.bf16 %v1813_v36, %v1813_v36 }
 0x579   :  { %2041 = vmatmul.mubr.bf16.vlgmr.msra.gmra.mrb[20].mxu0 %v1815_v63  ;;  %2082 = vmatmul.mubr.bf16.vlgmr.msra.gmra.mrb[28].mxu1 %v1815_v63 }
 0x57a   :  { %2383 = vmatprep.mubr.bf16.mxu0 %v4351_v0  ;;  %2426 = vmatprep.mubr.bf16.mxu1 %v4351_v0 }
 0x57b   :  { %2352 = vmatpush1.bf16.msra.mxu0 %v3956_v1  ;;  %2395 = vmatpush1.bf16.msra.mxu1 %v3959_v24 }
 0x57c   :  { %2353 = vmatprep.subr.bf16.mxu0 %v3964_v37  ;;  %2396 = vmatprep.subr.bf16.mxu1 %v3967_v40  ;;  %v2126_v40 = vrot.slane %v4892_v33, 6  ;;  %v4914_v33 = vld [vmem:[#allocation8 + $0x2c] ss:$16 sps:$4 sm:$0xff]  }
 0x57f   :  { %2354 = vmatpush1.bf16.msra.mxu0 %v3962_v43  ;;  %2397 = vmatpush1.bf16.msra.mxu1 %v3965_v12 }
 0x580   :  { %2355 = vmatprep.subr.bf16.mxu0 %v3970_v13  ;;  %2398 = vmatprep.subr.bf16.mxu1 %v3973_v39 }
 0x583   :  { %2356 = vmatpush1.bf16.msra.mxu0 %v3968_v42  ;;  %2399 = vmatpush1.bf16.msra.mxu1 %v3971_v38 }
 0x584   :  { %2357 = vmatprep.subr.bf16.mxu0 %v3976_v44  ;;  %2400 = vmatprep.subr.bf16.mxu1 %v3979_v41  ;;  %v2134_v44 = vld [vmem:[#allocation2] sm:$0xff] }
 0x587   :  { %2358 = vmatpush1.bf16.msra.mxu0 %v3974_v45  ;;  %2401 = vmatpush1.bf16.msra.mxu1 %v3977_v59  ;;  %v4908_v45 = vld [vmem:[#allocation8] ss:$16 sps:$4 sm:$0xff]   ;;  %v4910_v59 = vld [vmem:[#allocation8 + $0x8] ss:$16 sps:$4 sm:$0xff]  }
 0x588   :  { %2359 = vmatprep.subr.bf16.mxu0 %v3982_v46  ;;  %2402 = vmatprep.subr.bf16.mxu1 %v3985_v53  ;;  %v4912_v53 = vld [vmem:[#allocation8 + $0x24] ss:$16 sps:$4 sm:$0xff]  }
 0x58b   :  { %2360 = vmatpush1.bf16.msra.mxu0 %v3980_v47  ;;  %2403 = vmatpush1.bf16.msra.mxu1 %v3983_v57  ;;  %v4918_v47 = vld [vmem:[#allocation8 + $0x20] ss:$16 sps:$4 sm:$0xff]   ;;  %v4920_v57 = vld [vmem:[#allocation8 + $0x28] ss:$16 sps:$4 sm:$0xff]  }
 0x58c   :  { %2361 = vmatprep.subr.bf16.mxu0 %v3988_v10  ;;  %2404 = vmatprep.subr.bf16.mxu1 %v3991_v15  ;;  %v4924_v10 = vld [vmem:[#allocation8 + $0x44] ss:$16 sps:$4 sm:$0xff]   ;;  %v4926_v15 = vld [vmem:[#allocation8 + $0x4c] ss:$16 sps:$4 sm:$0xff]  }
 0x58f   :  { %2362 = vmatpush1.bf16.msra.mxu0 %v3986_v56  ;;  %2405 = vmatpush1.bf16.msra.mxu1 %v3989_v14  ;;  %v4932_v56 = vld [vmem:[#allocation8 + $0x40] ss:$16 sps:$4 sm:$0xff]   ;;  %v4934_v14 = vld [vmem:[#allocation8 + $0x48] ss:$16 sps:$4 sm:$0xff]  }
 0x590   :  { %2363 = vmatprep.subr.bf16.mxu0 %v3994_v3  ;;  %2406 = vmatprep.subr.bf16.mxu1 %v3997_v19  ;;  %v4938_v3 = vld [vmem:[#allocation8 + $0x64] ss:$16 sps:$4 sm:$0xff]   ;;  %v4940_v19 = vld [vmem:[#allocation8 + $0x6c] ss:$16 sps:$4 sm:$0xff]  }
 0x593   :  { %2364 = vmatpush1.bf16.msra.mxu0 %v3992_v5  ;;  %2407 = vmatpush1.bf16.msra.mxu1 %v3995_v48  ;;  %v4944_v5 = vld [vmem:[#allocation8 + $0x60] ss:$16 sps:$4 sm:$0xff]   ;;  %v4946_v48 = vld [vmem:[#allocation8 + $0x68] ss:$16 sps:$4 sm:$0xff]  }
 0x594   :  { %2365 = vmatprep.subr.bf16.mxu0 %v4000_v51  ;;  %2408 = vmatprep.subr.bf16.mxu1 %v4003_v6  ;;  %v4950_v51 = vld [vmem:[#allocation8 + $0x84] ss:$16 sps:$4 sm:$0xff]   ;;  %v4952_v6 = vld [vmem:[#allocation8 + $0x8c] ss:$16 sps:$4 sm:$0xff]  }
 0x597   :  { %2366 = vmatpush1.bf16.msra.mxu0 %v3998_v2  ;;  %2409 = vmatpush1.bf16.msra.mxu1 %v4001_v25  ;;  %v4956_v2 = vld [vmem:[#allocation8 + $0x80] ss:$16 sps:$4 sm:$0xff]   ;;  %v4958_v25 = vld [vmem:[#allocation8 + $0x88] ss:$16 sps:$4 sm:$0xff]  }
 0x598   :  { %2629 = vmatprep.subr.bf16.mxu0 %v4897_v54  ;;  %2670 = vmatprep.subr.bf16.mxu1 %v4899_v55 }
 0x64c   :  { %v2042_v4 = vpop.f32.mrb[20].mxu0  ;;  %v2083_v7 = vpop.f32.mrb[28].mxu1 }
 0x64d   :  { %v2094_v9 = vrot.slane %v2042_v4, 6  ;;  %v2044_v16 = vpop.f32.mrb[21].mxu0  ;;  %v2085_v18 = vpop.f32.mrb[29].mxu1  ;;  %v2096_v32 = vrot.slane %v2083_v7, 6  ;;  %v4962_v4 = vld [vmem:[#allocation8 + $0xa4] ss:$16 sps:$4 sm:$0xff]  }
 0x64e   :  { %v2095_v20 = vrot.slane %v2044_v16, 6  ;;  %v2046_v22 = vpop.f32.mrb[22].mxu0  ;;  %v2087_v23 = vpop.f32.mrb[30].mxu1  ;;  %v2097_v34 = vrot.slane %v2085_v18, 6  ;;  %v4964_v7 = vld [vmem:[#allocation8 + $0xac] ss:$16 sps:$4 sm:$0xff]  }
 0x64f   :  { %v2102_v26 = vadd.f32 %v2094_v9, %v4636_v58  ;;  %v2047_v27 = vpop.f32.mrb[23].mxu0  ;;  %v2088_v28 = vpop.f32.mrb[31].mxu1  ;;  %v2104_v35 = vadd.f32 %v2096_v32, %v4646_v8  ;;  %v4968_v9 = vld [vmem:[#allocation8 + $0xa0] ss:$16 sps:$4 sm:$0xff]   ;;  %v4970_v16 = vld [vmem:[#allocation8 + $0xa8] ss:$16 sps:$4 sm:$0xff]  }
 0x650   :  { %v2103_v29 = vadd.f32 %v2095_v20, %v4639_v61  ;;  %v2105_v36 = vadd.f32 %v2097_v34, %v4648_v11  ;;  %v4974_v18 = vld [vmem:[#allocation8 + $0xc4] ss:$16 sps:$4 sm:$0xff]   ;;  %v4976_v20 = vld [vmem:[#allocation8 + $0xcc] ss:$16 sps:$4 sm:$0xff]   ;;  %v4980_v22 = vld [vmem:[#allocation8 + $0xc0] ss:$16 sps:$4 sm:$0xff]  }
 0x651   :  { %v3718_v30 = vmul.f32 -1.442695, %v2102_v26  ;;  %v3720_v63 = vmul.f32 -1.442695, %v2104_v35  ;;  %v4982_v23 = vld [vmem:[#allocation8 + $0xc8] ss:$16 sps:$4 sm:$0xff]  }
 0x652   :  { %v3719_v31 = vmul.f32 -1.442695, %v2103_v29  ;;  %v4986_v26 = vld [vmem:[#allocation8 + $0xe4] ss:$16 sps:$4 sm:$0xff]   ;;  %v4988_v27 = vld [vmem:[#allocation8 + $0xec] ss:$16 sps:$4 sm:$0xff]  }
 0x653   :  { %4140 = vpow2.f32 %v3718_v30  ;;  %v4992_v28 = vld [vmem:[#allocation8 + $0xe0] ss:$16 sps:$4 sm:$0xff]   ;;  %v4994_v29 = vld [vmem:[#allocation8 + $0xe8] ss:$16 sps:$4 sm:$0xff]  }
 0x654   :  { %4142 = vpow2.f32 %v3719_v31  ;;  %v2169_v30 = vld [vmem:[%s5288_s6] sm:$0xf] }
 0x655   :  { %4144 = vtanh.f32 %v2105_v36  ;;  %v2174_v34 = vrot.slane %v2169_v30, %v88_v50  ;;  %v2182_v35 = vrot.slane %v2169_v30, %v96_v60 }
 0x656   :  { %4146 = vpow2.f32 %v3720_v63 }
 0x65d   :  { %v4141_v17 = vpop.eup %4140 }
 0x65e   :  { %v2109_v21 = vadd.f32 1.0, %v4141_v17  ;;  %v4143_v1 = vpop.eup %4142  ;;  %v2178_v17 = vrot.slane %v2169_v30, %v92_v52 }
 0x65f   :  { %v2115_v58 = vadd.f32 1.0, %v4143_v1  ;;  %v4145_v61 = vpop.eup %4144 }
 0x660   :  { %4148 = vrcp.f32 %v2109_v21  ;;  %v4147_v24 = vpop.eup %4146  ;;  %v2186_v21 = vrot.slane %v2169_v30, %v100_v62 }
 0x661   :  { %4150 = vrcp.f32 %v2115_v58  ;;  %v2121_v13 = vadd.f32 1.0, %v4147_v24 }
 0x663   :  { %4152 = vrcp.f32 %v2121_v13 }
 0x66a   :  { %v4149_v37 = vpop.eup %4148 }
 0x66b   :  { %v2129_v43 = vmul.f32 %v4149_v37, %v4145_v61  ;;  %v4151_v12 = vpop.eup %4150 }
 0x66c   :  { %v2128_v8 = vmul.f32 %v4151_v12, %v2126_v40 }
 0x66d   :  { %v4153_v11 = vpop.eup %4152 }
 0x66e   :  { %v2130_v39 = vadd.f32 %v2129_v43, %v2128_v8 }
 0x670   :  { %4154 = vtanh.f32 %v2130_v39 }
 0x67a   :  { %v4155_v42 = vpop.eup %4154 }
 0x67b   :  { %v2132_v38 = vmul.f32 %v4155_v42, %v4153_v11 }
 0x67d   :  { %2133 = vst [vmem:[#allocation2 + $0x8] sm:$0xc] %v2132_v38 }
 0x684   :  { %v2135_v41 = vld [vmem:[#allocation2 + $0x8] sm:$0xf] }
 0x685   :  { %v2136_v46 = vpack.c.bf16 %v2135_v41, %v2134_v44 }
 0x687   :  { %2384 = vmatmul.mubr.bf16.vlgmr.msra.gmra.mrb[24].mxu0 %v2136_v46  ;;  %2427 = vmatmul.mubr.bf16.vlgmr.msra.gmra.mrb[32].mxu1 %v2136_v46 }
 0x688   :  { %2630 = vmatpush1.bf16.msra.mxu0 %v4908_v45  ;;  %2671 = vmatpush1.bf16.msra.mxu1 %v4910_v59 }
 0x689   :  { %2631 = vmatprep.subr.bf16.mxu0 %v4912_v53  ;;  %2672 = vmatprep.subr.bf16.mxu1 %v4914_v33 }
 0x68a   :  { %2661 = vmatprep.mubr.bf16.mxu0 %v4351_v0  ;;  %2702 = vmatprep.mubr.bf16.mxu1 %v4351_v0 }
 0x68c   :  { %2632 = vmatpush1.bf16.msra.mxu0 %v4918_v47  ;;  %2673 = vmatpush1.bf16.msra.mxu1 %v4920_v57 }
 0x68d   :  { %2633 = vmatprep.subr.bf16.mxu0 %v4924_v10  ;;  %2674 = vmatprep.subr.bf16.mxu1 %v4926_v15 }
 0x690   :  { %2634 = vmatpush1.bf16.msra.mxu0 %v4932_v56  ;;  %2675 = vmatpush1.bf16.msra.mxu1 %v4934_v14 }
 0x691   :  { %2635 = vmatprep.subr.bf16.mxu0 %v4938_v3  ;;  %2676 = vmatprep.subr.bf16.mxu1 %v4940_v19 }
 0x694   :  { %2636 = vmatpush1.bf16.msra.mxu0 %v4944_v5  ;;  %2677 = vmatpush1.bf16.msra.mxu1 %v4946_v48 }
 0x695   :  { %2637 = vmatprep.subr.bf16.mxu0 %v4950_v51  ;;  %2678 = vmatprep.subr.bf16.mxu1 %v4952_v6 }
 0x698   :  { %2638 = vmatpush1.bf16.msra.mxu0 %v4956_v2  ;;  %2679 = vmatpush1.bf16.msra.mxu1 %v4958_v25 }
 0x699   :  { %2639 = vmatprep.subr.bf16.mxu0 %v4962_v4  ;;  %2680 = vmatprep.subr.bf16.mxu1 %v4964_v7 }
 0x69c   :  { %2640 = vmatpush1.bf16.msra.mxu0 %v4968_v9  ;;  %2681 = vmatpush1.bf16.msra.mxu1 %v4970_v16 }
 0x69d   :  { %2641 = vmatprep.subr.bf16.mxu0 %v4974_v18  ;;  %2682 = vmatprep.subr.bf16.mxu1 %v4976_v20 }
 0x6a0   :  { %2642 = vmatpush1.bf16.msra.mxu0 %v4980_v22  ;;  %2683 = vmatpush1.bf16.msra.mxu1 %v4982_v23 }
 0x6a1   :  { %2643 = vmatprep.subr.bf16.mxu0 %v4986_v26  ;;  %2684 = vmatprep.subr.bf16.mxu1 %v4988_v27 }
 0x6a4   :  { %2644 = vmatpush1.bf16.msra.mxu0 %v4992_v28  ;;  %2685 = vmatpush1.bf16.msra.mxu1 %v4994_v29 }
 0x6a5   :  { %2740 = vmatprep.subr.bf16.mxu0 %v4897_v54  ;;  %2781 = vmatprep.subr.bf16.mxu1 %v4899_v55 }
 0x6a7   :  { %2662 = vmatmul.mubr.bf16.vlgmr.msra.gmra.mrb[28].mxu0 %v4351_v0  ;;  %2703 = vmatmul.mubr.bf16.vlgmr.msra.gmra.mrb[36].mxu1 %v4351_v0 }
 0x6a8   :  { %2741 = vmatpush1.bf16.msra.mxu0 %v4908_v45  ;;  %2782 = vmatpush1.bf16.msra.mxu1 %v4910_v59 }
 0x6a9   :  { %2742 = vmatprep.subr.bf16.mxu0 %v4912_v53  ;;  %2783 = vmatprep.subr.bf16.mxu1 %v4914_v33 }
 0x6aa   :  { %2772 = vmatprep.mubr.bf16.mxu0 %v4351_v0  ;;  %2813 = vmatprep.mubr.bf16.mxu1 %v4351_v0 }
 0x6ac   :  { %2743 = vmatpush1.bf16.msra.mxu0 %v4918_v47  ;;  %2784 = vmatpush1.bf16.msra.mxu1 %v4920_v57 }
 0x6ad   :  { %2744 = vmatprep.subr.bf16.mxu0 %v4924_v10  ;;  %2785 = vmatprep.subr.bf16.mxu1 %v4926_v15 }
 0x6b0   :  { %2745 = vmatpush1.bf16.msra.mxu0 %v4932_v56  ;;  %2786 = vmatpush1.bf16.msra.mxu1 %v4934_v14 }
 0x6b1   :  { %2746 = vmatprep.subr.bf16.mxu0 %v4938_v3  ;;  %2787 = vmatprep.subr.bf16.mxu1 %v4940_v19 }
 0x6b4   :  { %2747 = vmatpush1.bf16.msra.mxu0 %v4944_v5  ;;  %2788 = vmatpush1.bf16.msra.mxu1 %v4946_v48 }
 0x6b5   :  { %2748 = vmatprep.subr.bf16.mxu0 %v4950_v51  ;;  %2789 = vmatprep.subr.bf16.mxu1 %v4952_v6 }
 0x6b8   :  { %2749 = vmatpush1.bf16.msra.mxu0 %v4956_v2  ;;  %2790 = vmatpush1.bf16.msra.mxu1 %v4958_v25 }
 0x6b9   :  { %2750 = vmatprep.subr.bf16.mxu0 %v4962_v4  ;;  %2791 = vmatprep.subr.bf16.mxu1 %v4964_v7 }
 0x6bc   :  { %2751 = vmatpush1.bf16.msra.mxu0 %v4968_v9  ;;  %2792 = vmatpush1.bf16.msra.mxu1 %v4970_v16 }
 0x6bd   :  { %2752 = vmatprep.subr.bf16.mxu0 %v4974_v18  ;;  %2793 = vmatprep.subr.bf16.mxu1 %v4976_v20 }
 0x6c0   :  { %2753 = vmatpush1.bf16.msra.mxu0 %v4980_v22  ;;  %2794 = vmatpush1.bf16.msra.mxu1 %v4982_v23 }
 0x6c1   :  { %2754 = vmatprep.subr.bf16.mxu0 %v4986_v26  ;;  %2795 = vmatprep.subr.bf16.mxu1 %v4988_v27 }
 0x6c4   :  { %2755 = vmatpush1.bf16.msra.mxu0 %v4992_v28  ;;  %2796 = vmatpush1.bf16.msra.mxu1 %v4994_v29 }
 0x6c5   :  { %2869 = vmatprep.subr.bf16.mxu0 %v4897_v54  ;;  %2910 = vmatprep.subr.bf16.mxu1 %v4899_v55 }
 0x75a   :  { %v2385_v31 = vpop.f32.mrb[24].mxu0  ;;  %v2428_v32 = vpop.f32.mrb[32].mxu1 }
 0x75b   :  { %v2387_v36 = vpop.f32.mrb[25].mxu0  ;;  %v2430_v63 = vpop.f32.mrb[33].mxu1  ;;  %v5057_v60 = vadd.f32 %v2385_v31, %v2174_v34  ;;  %v5063_v30 = vadd.f32 %v2428_v32, %v2182_v35 }
 0x75c   :  { %v2389_v1 = vpop.f32.mrb[26].mxu0  ;;  %v2432_v58 = vpop.f32.mrb[34].mxu1  ;;  %v5059_v12 = vadd.f32 %v2387_v36, %v2178_v17 }
 0x75d   :  { %v5049_v61 = vadd.f32 %v2389_v1, %v2174_v34  ;;  %v5051_v24 = vadd.f32 %v2432_v58, %v2182_v35  ;;  %v2391_v37 = vpop.f32.mrb[27].mxu0  ;;  %v2434_v40 = vpop.f32.mrb[35].mxu1  ;;  %v5066_v34 = vadd.f32 %v2430_v63, %v2186_v21 }
 0x75e   :  { %v5053_v50 = vadd.f32 %v2391_v37, %v2178_v17  ;;  %v5055_v43 = vadd.f32 %v2434_v40, %v2186_v21 }
 0x77a   :  { %v2663_v52 = vpop.f32.mrb[28].mxu0  ;;  %v2704_v13 = vpop.f32.mrb[36].mxu1 }
 0x77b   :  { %v2711_v49 = vadd.f32 %v2663_v52, %v5057_v60  ;;  %v2665_v62 = vpop.f32.mrb[29].mxu0  ;;  %v2706_v8 = vpop.f32.mrb[37].mxu1  ;;  %v2713_v31 = vadd.f32 %v2704_v13, %v5063_v30 }
 0x77c   :  { %v2712_v39 = vadd.f32 %v2665_v62, %v5059_v12  ;;  %v2667_v11 = vpop.f32.mrb[30].mxu0  ;;  %v2708_v42 = vpop.f32.mrb[38].mxu1  ;;  %v2714_v36 = vadd.f32 %v2706_v8, %v5066_v34 }
 0x77d   :  { %v3785_v38 = vmul.f32 -1.442695, %v2711_v49  ;;  %v2668_v44 = vpop.f32.mrb[31].mxu0  ;;  %v2709_v41 = vpop.f32.mrb[39].mxu1  ;;  %v3787_v17 = vmul.f32 -1.442695, %v2713_v31 }
 0x77e   :  { %v3786_v46 = vmul.f32 -1.442695, %v2712_v39 }
 0x77f   :  { %4156 = vpow2.f32 %v3785_v38 }
 0x780   :  { %4158 = vpow2.f32 %v3786_v46 }
 0x781   :  { %4160 = vtanh.f32 %v2714_v36 }
 0x782   :  { %4162 = vpow2.f32 %v3787_v17 }
 0x789   :  { %v4157_v1 = vpop.eup %4156 }
 0x78a   :  { %v2718_v58 = vadd.f32 1.0, %v4157_v1  ;;  %v4159_v37 = vpop.eup %4158 }
 0x78b   :  { %v2724_v40 = vadd.f32 1.0, %v4159_v37  ;;  %v4161_v52 = vpop.eup %4160 }
 0x78c   :  { %4164 = vrcp.f32 %v2718_v58  ;;  %v4163_v49 = vpop.eup %4162 }
 0x78d   :  { %4166 = vrcp.f32 %v2724_v40  ;;  %v2730_v39 = vadd.f32 1.0, %v4163_v49 }
 0x78f   :  { %4168 = vrcp.f32 %v2730_v39 }
 0x796   :  { %v4165_v32 = vpop.eup %4164 }
 0x797   :  { %v2735_v35 = vmul.f32 %v4165_v32, %v4161_v52  ;;  %v4167_v62 = vpop.eup %4166 }
 0x798   :  { %v2734_v13 = vmul.f32 0.0, %v4167_v62 }
 0x799   :  { %v4169_v21 = vpop.eup %4168 }
 0x79a   :  { %v5069_v63 = vadd.f32 %v2735_v35, %v2734_v13 }
 0x79c   :  { %4170 = vtanh.f32 %v5069_v63 }
 0x7a6   :  { %v4171_v8 = vpop.eup %4170 }
 0x7a7   :  { %v2738_v11 = vmul.f32 %v4171_v8, %v4169_v21 }
 0x7a9   :  { %v2739_v42 = vpack.c.bf16 %v2738_v11, %v2738_v11 }
 0x7ab   :  { %2773 = vmatmul.mubr.bf16.vlgmr.msra.gmra.mrb[32].mxu0 %v2739_v42  ;;  %2814 = vmatmul.mubr.bf16.vlgmr.msra.gmra.mrb[40].mxu1 %v2739_v42 }
 0x7ac   :  { %2870 = vmatpush1.bf16.msra.mxu0 %v4908_v45  ;;  %2911 = vmatpush1.bf16.msra.mxu1 %v4910_v59 }
 0x7ad   :  { %2871 = vmatprep.subr.bf16.mxu0 %v4912_v53  ;;  %2912 = vmatprep.subr.bf16.mxu1 %v4914_v33 }
 0x7ae   :  { %2901 = vmatprep.mubr.bf16.mxu0 %v4351_v0  ;;  %2942 = vmatprep.mubr.bf16.mxu1 %v4351_v0 }
 0x7b0   :  { %2872 = vmatpush1.bf16.msra.mxu0 %v4918_v47  ;;  %2913 = vmatpush1.bf16.msra.mxu1 %v4920_v57 }
 0x7b1   :  { %2873 = vmatprep.subr.bf16.mxu0 %v4924_v10  ;;  %2914 = vmatprep.subr.bf16.mxu1 %v4926_v15 }
 0x7b4   :  { %2874 = vmatpush1.bf16.msra.mxu0 %v4932_v56  ;;  %2915 = vmatpush1.bf16.msra.mxu1 %v4934_v14 }
 0x7b5   :  { %2875 = vmatprep.subr.bf16.mxu0 %v4938_v3  ;;  %2916 = vmatprep.subr.bf16.mxu1 %v4940_v19 }
 0x7b8   :  { %2876 = vmatpush1.bf16.msra.mxu0 %v4944_v5  ;;  %2917 = vmatpush1.bf16.msra.mxu1 %v4946_v48 }
 0x7b9   :  { %2877 = vmatprep.subr.bf16.mxu0 %v4950_v51  ;;  %2918 = vmatprep.subr.bf16.mxu1 %v4952_v6 }
 0x7bc   :  { %2878 = vmatpush1.bf16.msra.mxu0 %v4956_v2  ;;  %2919 = vmatpush1.bf16.msra.mxu1 %v4958_v25 }
 0x7bd   :  { %2879 = vmatprep.subr.bf16.mxu0 %v4962_v4  ;;  %2920 = vmatprep.subr.bf16.mxu1 %v4964_v7 }
 0x7c0   :  { %2880 = vmatpush1.bf16.msra.mxu0 %v4968_v9  ;;  %2921 = vmatpush1.bf16.msra.mxu1 %v4970_v16 }
 0x7c1   :  { %2881 = vmatprep.subr.bf16.mxu0 %v4974_v18  ;;  %2922 = vmatprep.subr.bf16.mxu1 %v4976_v20 }
 0x7c4   :  { %2882 = vmatpush1.bf16.msra.mxu0 %v4980_v22  ;;  %2923 = vmatpush1.bf16.msra.mxu1 %v4982_v23 }
 0x7c5   :  { %2883 = vmatprep.subr.bf16.mxu0 %v4986_v26  ;;  %2924 = vmatprep.subr.bf16.mxu1 %v4988_v27 }
 0x7c8   :  { %2884 = vmatpush1.bf16.msra.mxu0 %v4992_v28  ;;  %2925 = vmatpush1.bf16.msra.mxu1 %v4994_v29 }
 0x7c9   :  { %2998 = vmatprep.subr.bf16.mxu0 %v4897_v54  ;;  %3039 = vmatprep.subr.bf16.mxu1 %v4899_v55 }
 0x87e   :  { %v2774_v38 = vpop.f32.mrb[32].mxu0  ;;  %v2815_v44 = vpop.f32.mrb[40].mxu1 }
 0x87f   :  { %v2826_v41 = vrot.slane %v2774_v38, 6  ;;  %v2776_v46 = vpop.f32.mrb[33].mxu0  ;;  %v2817_v31 = vpop.f32.mrb[41].mxu1  ;;  %v2828_v35 = vrot.slane %v2815_v44, 6  ;;  %v2858_v44 = vrot.slane %v5069_v63, 6 }
 0x880   :  { %v2827_v36 = vrot.slane %v2776_v46, 6  ;;  %v2778_v17 = vpop.f32.mrb[34].mxu0  ;;  %v2819_v1 = vpop.f32.mrb[42].mxu1  ;;  %v2829_v62 = vrot.slane %v2817_v31, 6 }
 0x881   :  { %v2834_v58 = vadd.f32 %v2826_v41, %v5057_v60  ;;  %v2779_v37 = vpop.f32.mrb[35].mxu0  ;;  %v2820_v40 = vpop.f32.mrb[43].mxu1  ;;  %v2836_v39 = vadd.f32 %v2828_v35, %v5063_v30 }
 0x882   :  { %v2835_v52 = vadd.f32 %v2827_v36, %v5059_v12  ;;  %v2837_v13 = vadd.f32 %v2829_v62, %v5066_v34 }
 0x883   :  { %v3788_v49 = vmul.f32 -1.442695, %v2834_v58  ;;  %v3790_v21 = vmul.f32 -1.442695, %v2836_v39 }
 0x884   :  { %v3789_v32 = vmul.f32 -1.442695, %v2835_v52 }
 0x885   :  { %4172 = vpow2.f32 %v3788_v49 }
 0x886   :  { %4174 = vpow2.f32 %v3789_v32 }
 0x887   :  { %4176 = vtanh.f32 %v2837_v13 }
 0x888   :  { %4178 = vpow2.f32 %v3790_v21 }
 0x88f   :  { %v4173_v8 = vpop.eup %4172 }
 0x890   :  { %v2841_v11 = vadd.f32 1.0, %v4173_v8  ;;  %v4175_v42 = vpop.eup %4174 }
 0x891   :  { %v2847_v38 = vadd.f32 1.0, %v4175_v42  ;;  %v4177_v41 = vpop.eup %4176 }
 0x892   :  { %4180 = vrcp.f32 %v2841_v11  ;;  %v4179_v46 = vpop.eup %4178 }
 0x893   :  { %4182 = vrcp.f32 %v2847_v38  ;;  %v2853_v1 = vadd.f32 1.0, %v4179_v46 }
 0x895   :  { %4184 = vrcp.f32 %v2853_v1 }
 0x89c   :  { %v4181_v36 = vpop.eup %4180 }
 0x89d   :  { %v2861_v17 = vmul.f32 %v4181_v36, %v4177_v41  ;;  %v4183_v31 = vpop.eup %4182 }
 0x89e   :  { %v2860_v58 = vmul.f32 %v4183_v31, %v2858_v44 }
 0x89f   :  { %v4185_v40 = vpop.eup %4184 }
 0x8a0   :  { %v5111_v37 = vadd.f32 %v2861_v17, %v2860_v58 }
 0x8a2   :  { %4186 = vtanh.f32 %v5111_v37 }
 0x8ac   :  { %v4187_v52 = vpop.eup %4186 }
 0x8ad   :  { %v2864_v49 = vmul.f32 %v4187_v52, %v4185_v40 }
 0x8af   :  { %v2865_v32 = vpack.c.bf16 %v2864_v49, %v2864_v49 }
 0x8b1   :  { %v2867_v35 = vrot.slane %v2865_v32, 1 }
 0x8b3   :  { %2902 = vmatmul.mubr.bf16.vlgmr.msra.gmra.mrb[36].mxu0 %v2867_v35  ;;  %2943 = vmatmul.mubr.bf16.vlgmr.msra.gmra.mrb[44].mxu1 %v2867_v35 }
 0x8b4   :  { %2999 = vmatpush1.bf16.msra.mxu0 %v4908_v45  ;;  %3040 = vmatpush1.bf16.msra.mxu1 %v4910_v59 }
 0x8b5   :  { %3000 = vmatprep.subr.bf16.mxu0 %v4912_v53  ;;  %3041 = vmatprep.subr.bf16.mxu1 %v4914_v33 }
 0x8b6   :  { %3030 = vmatprep.mubr.bf16.mxu0 %v4351_v0  ;;  %3071 = vmatprep.mubr.bf16.mxu1 %v4351_v0 }
 0x8b8   :  { %3001 = vmatpush1.bf16.msra.mxu0 %v4918_v47  ;;  %3042 = vmatpush1.bf16.msra.mxu1 %v4920_v57 }
 0x8b9   :  { %3002 = vmatprep.subr.bf16.mxu0 %v4924_v10  ;;  %3043 = vmatprep.subr.bf16.mxu1 %v4926_v15 }
 0x8bc   :  { %3003 = vmatpush1.bf16.msra.mxu0 %v4932_v56  ;;  %3044 = vmatpush1.bf16.msra.mxu1 %v4934_v14 }
 0x8bd   :  { %3004 = vmatprep.subr.bf16.mxu0 %v4938_v3  ;;  %3045 = vmatprep.subr.bf16.mxu1 %v4940_v19 }
 0x8c0   :  { %3005 = vmatpush1.bf16.msra.mxu0 %v4944_v5  ;;  %3046 = vmatpush1.bf16.msra.mxu1 %v4946_v48 }
 0x8c1   :  { %3006 = vmatprep.subr.bf16.mxu0 %v4950_v51  ;;  %3047 = vmatprep.subr.bf16.mxu1 %v4952_v6 }
 0x8c4   :  { %3007 = vmatpush1.bf16.msra.mxu0 %v4956_v2  ;;  %3048 = vmatpush1.bf16.msra.mxu1 %v4958_v25 }
 0x8c5   :  { %3008 = vmatprep.subr.bf16.mxu0 %v4962_v4  ;;  %3049 = vmatprep.subr.bf16.mxu1 %v4964_v7 }
 0x8c8   :  { %3009 = vmatpush1.bf16.msra.mxu0 %v4968_v9  ;;  %3050 = vmatpush1.bf16.msra.mxu1 %v4970_v16 }
 0x8c9   :  { %3010 = vmatprep.subr.bf16.mxu0 %v4974_v18  ;;  %3051 = vmatprep.subr.bf16.mxu1 %v4976_v20 }
 0x8cc   :  { %3011 = vmatpush1.bf16.msra.mxu0 %v4980_v22  ;;  %3052 = vmatpush1.bf16.msra.mxu1 %v4982_v23 }
 0x8cd   :  { %3012 = vmatprep.subr.bf16.mxu0 %v4986_v26  ;;  %3053 = vmatprep.subr.bf16.mxu1 %v4988_v27 }
 0x8d0   :  { %3013 = vmatpush1.bf16.msra.mxu0 %v4992_v28  ;;  %3054 = vmatpush1.bf16.msra.mxu1 %v4994_v29 }
 0x8d1   :  { %3127 = vmatprep.subr.bf16.mxu0 %v4897_v54  ;;  %3168 = vmatprep.subr.bf16.mxu1 %v4899_v55 }
 0x986   :  { %v2903_v63 = vpop.f32.mrb[36].mxu0  ;;  %v2944_v62 = vpop.f32.mrb[44].mxu1 }
 0x987   :  { %v2955_v39 = vrot.slane %v2903_v63, 4  ;;  %v2905_v13 = vpop.f32.mrb[37].mxu0  ;;  %v2946_v21 = vpop.f32.mrb[45].mxu1  ;;  %v2957_v31 = vrot.slane %v2944_v62, 4  ;;  %v2987_v62 = vrot.slane %v5111_v37, 6 }
 0x988   :  { %v2956_v8 = vrot.slane %v2905_v13, 4  ;;  %v2907_v11 = vpop.f32.mrb[38].mxu0  ;;  %v2948_v42 = vpop.f32.mrb[46].mxu1  ;;  %v2958_v1 = vrot.slane %v2946_v21, 4 }
 0x989   :  { %v2963_v38 = vadd.f32 %v2955_v39, %v5057_v60  ;;  %v2908_v41 = vpop.f32.mrb[39].mxu0  ;;  %v2949_v46 = vpop.f32.mrb[47].mxu1  ;;  %v2965_v58 = vadd.f32 %v2957_v31, %v5063_v30 }
 0x98a   :  { %v2964_v36 = vadd.f32 %v2956_v8, %v5059_v12  ;;  %v2966_v40 = vadd.f32 %v2958_v1, %v5066_v34 }
 0x98b   :  { %v3791_v44 = vmul.f32 -1.442695, %v2963_v38  ;;  %v3793_v52 = vmul.f32 -1.442695, %v2965_v58 }
 0x98c   :  { %v3792_v17 = vmul.f32 -1.442695, %v2964_v36 }
 0x98d   :  { %4188 = vpow2.f32 %v3791_v44 }
 0x98e   :  { %4190 = vpow2.f32 %v3792_v17 }
 0x98f   :  { %4192 = vtanh.f32 %v2966_v40 }
 0x990   :  { %4194 = vpow2.f32 %v3793_v52 }
 0x997   :  { %v4189_v49 = vpop.eup %4188 }
 0x998   :  { %v2970_v32 = vadd.f32 1.0, %v4189_v49  ;;  %v4191_v35 = vpop.eup %4190 }
 0x999   :  { %v2976_v63 = vadd.f32 1.0, %v4191_v35  ;;  %v4193_v39 = vpop.eup %4192 }
 0x99a   :  { %4196 = vrcp.f32 %v2970_v32  ;;  %v4195_v13 = vpop.eup %4194 }
 0x99b   :  { %4198 = vrcp.f32 %v2976_v63  ;;  %v2982_v42 = vadd.f32 1.0, %v4195_v13 }
 0x99d   :  { %4200 = vrcp.f32 %v2982_v42 }
 0x9a4   :  { %v4197_v8 = vpop.eup %4196 }
 0x9a5   :  { %v2990_v11 = vmul.f32 %v4197_v8, %v4193_v39  ;;  %v4199_v21 = vpop.eup %4198 }
 0x9a6   :  { %v2989_v38 = vmul.f32 %v4199_v21, %v2987_v62 }
 0x9a7   :  { %v4201_v46 = vpop.eup %4200 }
 0x9a8   :  { %v5153_v41 = vadd.f32 %v2990_v11, %v2989_v38 }
 0x9aa   :  { %4202 = vtanh.f32 %v5153_v41 }
 0x9b4   :  { %v4203_v36 = vpop.eup %4202 }
 0x9b5   :  { %v2993_v44 = vmul.f32 %v4203_v36, %v4201_v46 }
 0x9b7   :  { %v2994_v17 = vpack.c.bf16 %v2993_v44, %v2993_v44 }
 0x9b9   :  { %v2996_v31 = vrot.slane %v2994_v17, 2 }
 0x9bb   :  { %3031 = vmatmul.mubr.bf16.vlgmr.msra.gmra.mrb[40].mxu0 %v2996_v31  ;;  %3072 = vmatmul.mubr.bf16.vlgmr.msra.gmra.mrb[48].mxu1 %v2996_v31 }
 0x9bc   :  { %3128 = vmatpush1.bf16.msra.mxu0 %v4908_v45  ;;  %3169 = vmatpush1.bf16.msra.mxu1 %v4910_v59 }
 0x9bd   :  { %3129 = vmatprep.subr.bf16.mxu0 %v4912_v53  ;;  %3170 = vmatprep.subr.bf16.mxu1 %v4914_v33 }
 0x9be   :  { %3159 = vmatprep.mubr.bf16.mxu0 %v4351_v0  ;;  %3200 = vmatprep.mubr.bf16.mxu1 %v4351_v0 }
 0x9c0   :  { %3130 = vmatpush1.bf16.msra.mxu0 %v4918_v47  ;;  %3171 = vmatpush1.bf16.msra.mxu1 %v4920_v57 }
 0x9c1   :  { %3131 = vmatprep.subr.bf16.mxu0 %v4924_v10  ;;  %3172 = vmatprep.subr.bf16.mxu1 %v4926_v15 }
 0x9c4   :  { %3132 = vmatpush1.bf16.msra.mxu0 %v4932_v56  ;;  %3173 = vmatpush1.bf16.msra.mxu1 %v4934_v14 }
 0x9c5   :  { %3133 = vmatprep.subr.bf16.mxu0 %v4938_v3  ;;  %3174 = vmatprep.subr.bf16.mxu1 %v4940_v19 }
 0x9c8   :  { %3134 = vmatpush1.bf16.msra.mxu0 %v4944_v5  ;;  %3175 = vmatpush1.bf16.msra.mxu1 %v4946_v48 }
 0x9c9   :  { %3135 = vmatprep.subr.bf16.mxu0 %v4950_v51  ;;  %3176 = vmatprep.subr.bf16.mxu1 %v4952_v6 }
 0x9cc   :  { %3136 = vmatpush1.bf16.msra.mxu0 %v4956_v2  ;;  %3177 = vmatpush1.bf16.msra.mxu1 %v4958_v25 }
 0x9cd   :  { %3137 = vmatprep.subr.bf16.mxu0 %v4962_v4  ;;  %3178 = vmatprep.subr.bf16.mxu1 %v4964_v7 }
 0x9d0   :  { %3138 = vmatpush1.bf16.msra.mxu0 %v4968_v9  ;;  %3179 = vmatpush1.bf16.msra.mxu1 %v4970_v16 }
 0x9d1   :  { %3139 = vmatprep.subr.bf16.mxu0 %v4974_v18  ;;  %3180 = vmatprep.subr.bf16.mxu1 %v4976_v20 }
 0x9d4   :  { %3140 = vmatpush1.bf16.msra.mxu0 %v4980_v22  ;;  %3181 = vmatpush1.bf16.msra.mxu1 %v4982_v23 }
 0x9d5   :  { %3141 = vmatprep.subr.bf16.mxu0 %v4986_v26  ;;  %3182 = vmatprep.subr.bf16.mxu1 %v4988_v27 }
 0x9d8   :  { %3142 = vmatpush1.bf16.msra.mxu0 %v4992_v28  ;;  %3183 = vmatpush1.bf16.msra.mxu1 %v4994_v29 }
 0x9d9   :  { %3241 = vmatprep.subr.bf16.mxu0 %v4897_v54  ;;  %3282 = vmatprep.subr.bf16.mxu1 %v4899_v55 }
 0xa8e   :  { %v3032_v37 = vpop.f32.mrb[40].mxu0  ;;  %v3073_v1 = vpop.f32.mrb[48].mxu1 }
 0xa8f   :  { %v3084_v58 = vrot.slane %v3032_v37, 2  ;;  %v3034_v40 = vpop.f32.mrb[41].mxu0  ;;  %v3075_v52 = vpop.f32.mrb[49].mxu1  ;;  %v3086_v54 = vrot.slane %v3073_v1, 2  ;;  %v3116_v37 = vrot.slane %v5153_v41, 6 }
 0xa90   :  { %v3085_v49 = vrot.slane %v3034_v40, 2  ;;  %v3036_v32 = vpop.f32.mrb[42].mxu0  ;;  %v3077_v35 = vpop.f32.mrb[50].mxu1  ;;  %v3087_v55 = vrot.slane %v3075_v52, 2 }
 0xa91   :  { %v3092_v63 = vadd.f32 %v3084_v58, %v5057_v60  ;;  %v3037_v39 = vpop.f32.mrb[43].mxu0  ;;  %v3078_v13 = vpop.f32.mrb[51].mxu1  ;;  %v3094_v21 = vadd.f32 %v3086_v54, %v5063_v30  ;;  %v4056_v54 = vld [vmem:[%s5289_s7 + $0x20] sm:$0xff]  }
 0xa92   :  { %v3093_v8 = vadd.f32 %v3085_v49, %v5059_v12  ;;  %v3095_v42 = vadd.f32 %v3087_v55, %v5066_v34  ;;  %v4052_v39 = vld [vmem:[%s5289_s7] sm:$0xff]   ;;  %v4352_v13 = vmov 0.0   ;;  %v4057_v55 = vld [vmem:[%s5289_s7 + $0x28] sm:$0xff]  }
 0xa93   :  { %v3794_v62 = vmul.f32 -1.442695, %v3092_v63  ;;  %v3796_v38 = vmul.f32 -1.442695, %v3094_v21  ;;  %v4058_v21 = vld [vmem:[%s5289_s7 + $0x30] sm:$0xff]  }
 0xa94   :  { %v3795_v11 = vmul.f32 -1.442695, %v3093_v8  ;;  %v4053_v8 = vld [vmem:[%s5289_s7 + $0x8] sm:$0xff]  }
 0xa95   :  { %4204 = vpow2.f32 %v3794_v62  ;;  %v4054_v62 = vld [vmem:[%s5289_s7 + $0x10] sm:$0xff]  }
 0xa96   :  { %4206 = vpow2.f32 %v3795_v11  ;;  %v4055_v11 = vld [vmem:[%s5289_s7 + $0x18] sm:$0xff]  }
 0xa97   :  { %4208 = vtanh.f32 %v3095_v42  ;;  %v4059_v42 = vld [vmem:[%s5289_s7 + $0x38] sm:$0xff]  }
 0xa98   :  { %4210 = vpow2.f32 %v3796_v38 }
 0xa9f   :  { %v4205_v46 = vpop.eup %4204 }
 0xaa0   :  { %v3099_v36 = vadd.f32 1.0, %v4205_v46  ;;  %v4207_v44 = vpop.eup %4206 }
 0xaa1   :  { %v3105_v60 = vadd.f32 1.0, %v4207_v44  ;;  %v4209_v12 = vpop.eup %4208 }
 0xaa2   :  { %4212 = vrcp.f32 %v3099_v36  ;;  %v4211_v17 = vpop.eup %4210 }
 0xaa3   :  { %4214 = vrcp.f32 %v3105_v60  ;;  %v3111_v40 = vadd.f32 1.0, %v4211_v17 }
 0xaa5   :  { %4216 = vrcp.f32 %v3111_v40 }
 0xaac   :  { %v4213_v31 = vpop.eup %4212 }
 0xaad   :  { %v3119_v1 = vmul.f32 %v4213_v31, %v4209_v12  ;;  %v4215_v58 = vpop.eup %4214 }
 0xaae   :  { %v3118_v30 = vmul.f32 %v4215_v58, %v3116_v37 }
 0xaaf   :  { %v4217_v34 = vpop.eup %4216 }
 0xab0   :  { %v5195_v52 = vadd.f32 %v3119_v1, %v3118_v30 }
 0xab2   :  { %4218 = vtanh.f32 %v5195_v52 }
 0xabc   :  { %v4219_v49 = vpop.eup %4218 }
 0xabd   :  { %v3122_v32 = vmul.f32 %v4219_v49, %v4217_v34 }
 0xabf   :  { %v3123_v35 = vpack.c.bf16 %v3122_v32, %v3122_v32 }
 0xac1   :  { %v3125_v63 = vrot.slane %v3123_v35, 3 }
 0xac3   :  { %3160 = vmatmul.mubr.bf16.vlgmr.msra.gmra.mrb[44].mxu0 %v3125_v63  ;;  %3201 = vmatmul.mubr.bf16.vlgmr.msra.gmra.mrb[52].mxu1 %v3125_v63 }
 0xac4   :  { %3242 = vmatpush1.bf16.msra.mxu0 %v4908_v45  ;;  %3283 = vmatpush1.bf16.msra.mxu1 %v4910_v59 }
 0xac5   :  { %3243 = vmatprep.subr.bf16.mxu0 %v4912_v53  ;;  %3284 = vmatprep.subr.bf16.mxu1 %v4914_v33 }
 0xac6   :  { %3273 = vmatprep.mubr.bf16.mxu0 %v4351_v0  ;;  %3314 = vmatprep.mubr.bf16.mxu1 %v4351_v0 }
 0xac8   :  { %3244 = vmatpush1.bf16.msra.mxu0 %v4918_v47  ;;  %3285 = vmatpush1.bf16.msra.mxu1 %v4920_v57 }
 0xac9   :  { %3245 = vmatprep.subr.bf16.mxu0 %v4924_v10  ;;  %3286 = vmatprep.subr.bf16.mxu1 %v4926_v15 }
 0xacc   :  { %3246 = vmatpush1.bf16.msra.mxu0 %v4932_v56  ;;  %3287 = vmatpush1.bf16.msra.mxu1 %v4934_v14 }
 0xacd   :  { %3247 = vmatprep.subr.bf16.mxu0 %v4938_v3  ;;  %3288 = vmatprep.subr.bf16.mxu1 %v4940_v19 }
 0xad0   :  { %3248 = vmatpush1.bf16.msra.mxu0 %v4944_v5  ;;  %3289 = vmatpush1.bf16.msra.mxu1 %v4946_v48 }
 0xad1   :  { %3249 = vmatprep.subr.bf16.mxu0 %v4950_v51  ;;  %3290 = vmatprep.subr.bf16.mxu1 %v4952_v6 }
 0xad4   :  { %3250 = vmatpush1.bf16.msra.mxu0 %v4956_v2  ;;  %3291 = vmatpush1.bf16.msra.mxu1 %v4958_v25 }
 0xad5   :  { %3251 = vmatprep.subr.bf16.mxu0 %v4962_v4  ;;  %3292 = vmatprep.subr.bf16.mxu1 %v4964_v7 }
 0xad8   :  { %3252 = vmatpush1.bf16.msra.mxu0 %v4968_v9  ;;  %3293 = vmatpush1.bf16.msra.mxu1 %v4970_v16  ;;  %v3233_v16 = vrot.slane %v5195_v52, 6 }
 0xad9   :  { %3253 = vmatprep.subr.bf16.mxu0 %v4974_v18  ;;  %3294 = vmatprep.subr.bf16.mxu1 %v4976_v20 }
 0xadc   :  { %3254 = vmatpush1.bf16.msra.mxu0 %v4980_v22  ;;  %3295 = vmatpush1.bf16.msra.mxu1 %v4982_v23 }
 0xadd   :  { %3255 = vmatprep.subr.bf16.mxu0 %v4986_v26  ;;  %3296 = vmatprep.subr.bf16.mxu1 %v4988_v27 }
 0xae0   :  { %3256 = vmatpush1.bf16.msra.mxu0 %v4992_v28  ;;  %3297 = vmatpush1.bf16.msra.mxu1 %v4994_v29 }
 0xae1   :  { %3821 = vmatprep.subr.bf16.mxu0 %v4352_v13 }
 0xb96   :  { %v3161_v0 = vpop.f32.mrb[44].mxu0  ;;  %v3202_v45 = vpop.f32.mrb[52].mxu1 }
 0xb97   :  { %v3209_v59 = vadd.f32 %v3161_v0, %v5049_v61  ;;  %v3163_v53 = vpop.f32.mrb[45].mxu0  ;;  %v3204_v33 = vpop.f32.mrb[53].mxu1  ;;  %v3211_v19 = vadd.f32 %v3202_v45, %v5051_v24 }
 0xb98   :  { %v3210_v47 = vadd.f32 %v3163_v53, %v5053_v50  ;;  %v3165_v57 = vpop.f32.mrb[46].mxu0  ;;  %v3206_v10 = vpop.f32.mrb[54].mxu1  ;;  %v3212_v5 = vadd.f32 %v3204_v33, %v5055_v43 }
 0xb99   :  { %v3797_v15 = vmul.f32 -1.442695, %v3209_v59  ;;  %v3166_v56 = vpop.f32.mrb[47].mxu0  ;;  %v3207_v14 = vpop.f32.mrb[55].mxu1  ;;  %v3799_v48 = vmul.f32 -1.442695, %v3211_v19 }
 0xb9a   :  { %v3798_v3 = vmul.f32 -1.442695, %v3210_v47 }
 0xb9b   :  { %4220 = vpow2.f32 %v3797_v15 }
 0xb9c   :  { %4222 = vpow2.f32 %v3798_v3 }
 0xb9d   :  { %4224 = vtanh.f32 %v3212_v5 }
 0xb9e   :  { %4226 = vpow2.f32 %v3799_v48  ;;  %v3803_v48 = vld [vmem:[%s5290_s8] ss:$0 sm:$0xff] }
 0xba5   :  { %v4221_v51 = vpop.eup %4220 }
 0xba6   :  { %v3216_v6 = vadd.f32 1.0, %v4221_v51  ;;  %v4223_v2 = vpop.eup %4222 }
 0xba7   :  { %v3222_v25 = vadd.f32 1.0, %v4223_v2  ;;  %v4225_v4 = vpop.eup %4224 }
 0xba8   :  { %4228 = vrcp.f32 %v3216_v6  ;;  %v4227_v7 = vpop.eup %4226 }
 0xba9   :  { %4230 = vrcp.f32 %v3222_v25  ;;  %v3228_v22 = vadd.f32 1.0, %v4227_v7 }
 0xbab   :  { %4232 = vrcp.f32 %v3228_v22 }
 0xbb2   :  { %v4229_v9 = vpop.eup %4228 }
 0xbb3   :  { %v3236_v18 = vmul.f32 %v4229_v9, %v4225_v4  ;;  %v4231_v20 = vpop.eup %4230 }
 0xbb4   :  { %v3235_v23 = vmul.f32 %v4231_v20, %v3233_v16 }
 0xbb5   :  { %v4233_v27 = vpop.eup %4232 }
 0xbb6   :  { %v5235_v26 = vadd.f32 %v3236_v18, %v3235_v23 }
 0xbb8   :  { %4234 = vtanh.f32 %v5235_v26  ;;  %v3359_v47 = vrot.slane %v5235_v26, 6 }
 0xbc2   :  { %v4235_v28 = vpop.eup %4234 }
 0xbc3   :  { %v3239_v29 = vmul.f32 %v4235_v28, %v4233_v27 }
 0xbc5   :  { %v3240_v41 = vpack.c.bf16 %v3239_v29, %v3239_v29 }
 0xbc7   :  { %3274 = vmatmul.mubr.bf16.vlgmr.msra.gmra.mrb[48].mxu0 %v3240_v41  ;;  %3315 = vmatmul.mubr.bf16.vlgmr.msra.gmra.mrb[56].mxu1 %v3240_v41 }
 0xbc8   :  { %3822 = vmatpush3.bf16.msra.mxu0 %v4052_v39  ;;  %3837 = vmatprep.mubr.msk.bf16.mxu0 %vm4353_vm2, %v4352_v13 }
 0xbc9   :  { %3823 = vmatprep.subr.bf16.mxu0 %v4352_v13 }
 0xbcc   :  { %3824 = vmatpush3.bf16.msra.mxu0 %v4053_v8 }
 0xbcd   :  { %3825 = vmatprep.subr.bf16.mxu0 %v4352_v13 }
 0xbd0   :  { %3826 = vmatpush3.bf16.msra.mxu0 %v4054_v62 }
 0xbd1   :  { %3827 = vmatprep.subr.bf16.mxu0 %v4352_v13 }
 0xbd4   :  { %3828 = vmatpush3.bf16.msra.mxu0 %v4055_v11 }
 0xbd5   :  { %3829 = vmatprep.subr.bf16.mxu0 %v4352_v13 }
 0xbd8   :  { %3830 = vmatpush3.bf16.msra.mxu0 %v4056_v54 }
 0xbd9   :  { %3831 = vmatprep.subr.bf16.mxu0 %v4352_v13 }
 0xbdc   :  { %3832 = vmatpush3.bf16.msra.mxu0 %v4057_v55 }
 0xbdd   :  { %3833 = vmatprep.subr.bf16.mxu0 %v4352_v13 }
 0xbe0   :  { %3834 = vmatpush3.bf16.msra.mxu0 %v4058_v21 }
 0xbe1   :  { %3835 = vmatprep.subr.bf16.mxu0 %v4352_v13 }
 0xbe4   :  { %3836 = vmatpush3.bf16.msra.mxu0 %v4059_v42 }
 0xc9a   :  { %v3275_v38 = vpop.f32.mrb[48].mxu0  ;;  %v3316_v46 = vpop.f32.mrb[56].mxu1 }
 0xc9b   :  { %v3327_v36 = vrot.slane %v3275_v38, 6  ;;  %v3277_v44 = vpop.f32.mrb[49].mxu0  ;;  %v3318_v60 = vpop.f32.mrb[57].mxu1  ;;  %v3329_v34 = vrot.slane %v3316_v46, 6 }
 0xc9c   :  { %v3328_v12 = vrot.slane %v3277_v44, 6  ;;  %v3279_v17 = vpop.f32.mrb[50].mxu0  ;;  %v3320_v31 = vpop.f32.mrb[58].mxu1  ;;  %v3330_v49 = vrot.slane %v3318_v60, 6 }
 0xc9d   :  { %v3335_v37 = vadd.f32 %v3327_v36, %v5049_v61  ;;  %v3280_v1 = vpop.f32.mrb[51].mxu0  ;;  %v3321_v58 = vpop.f32.mrb[59].mxu1  ;;  %v3337_v32 = vadd.f32 %v3329_v34, %v5051_v24 }
 0xc9e   :  { %v3336_v40 = vadd.f32 %v3328_v12, %v5053_v50  ;;  %v3338_v35 = vadd.f32 %v3330_v49, %v5055_v43 }
 0xc9f   :  { %v3800_v30 = vmul.f32 -1.442695, %v3335_v37  ;;  %v3802_v63 = vmul.f32 -1.442695, %v3337_v32 }
 0xca0   :  { %v3801_v52 = vmul.f32 -1.442695, %v3336_v40 }
 0xca1   :  { %4236 = vpow2.f32 %v3800_v30 }
 0xca2   :  { %4238 = vpow2.f32 %v3801_v52 }
 0xca3   :  { %4240 = vtanh.f32 %v3338_v35 }
 0xca4   :  { %4242 = vpow2.f32 %v3802_v63 }
 0xcab   :  { %v4237_v0 = vpop.eup %4236 }
 0xcac   :  { %v3342_v45 = vadd.f32 1.0, %v4237_v0  ;;  %v4239_v59 = vpop.eup %4238 }
 0xcad   :  { %v3348_v61 = vadd.f32 1.0, %v4239_v59  ;;  %v4241_v50 = vpop.eup %4240 }
 0xcae   :  { %4244 = vrcp.f32 %v3342_v45  ;;  %v4243_v53 = vpop.eup %4242 }
 0xcaf   :  { %4246 = vrcp.f32 %v3348_v61  ;;  %v3354_v15 = vadd.f32 1.0, %v4243_v53 }
 0xcb1   :  { %4248 = vrcp.f32 %v3354_v15 }
 0xcb8   :  { %v4245_v33 = vpop.eup %4244 }
 0xcb9   :  { %v3362_v57 = vmul.f32 %v4245_v33, %v4241_v50  ;;  %v4247_v10 = vpop.eup %4246 }
 0xcba   :  { %v3361_v24 = vmul.f32 %v4247_v10, %v3359_v47 }
 0xcbb   :  { %v4249_v43 = vpop.eup %4248 }
 0xcbc   :  { %v3363_v56 = vadd.f32 %v3362_v57, %v3361_v24 }
 0xcbe   :  { %4250 = vtanh.f32 %v3363_v56 }
 0xcc8   :  { %v4251_v14 = vpop.eup %4250 }
 0xcc9   :  { %v3365_v3 = vmul.f32 %v4251_v14, %v4249_v43 }
 0xccb   :  { %v3366_v19 = vpack.c.bf16 %v3365_v3, %v3365_v3 }
 0xccd   :  { %v3391_v5 = vrot.slane %v3366_v19, 1 }
 0xccf   :  { %3838 = vmatmul.mubr.bf16.vlgmr.msra.gmra.mrb[52].mxu0 %v3391_v5 }
 0xda2   :  { %v3475_v51 = vpop.f32.mrb[52].mxu0 }
 0xda3   :  { %v3476_v6 = vadd.f32 %v3803_v48, %v3475_v51  ;;  %v3839_v2 = vpop.f32.mrb[53].mxu0 }
 0xda4   :  { %v3478_v25 = vpop.f32.mrb[54].mxu0 }
 0xda5   :  { %v3840_v4 = vpop.f32.mrb[55].mxu0  ;;  %3482 = vst.msk [vmem:[#allocation9] sm:$0x3] %vm3481_vm3, %v3476_v6 }
 0xda6   :  { %4329 = shalt.err (!%p4326_p0)
}
 0xda7   :  { %s4330_s8 = scalar_lea.hbm %s5291_s9, 32 }
 0xda8   :  { %p4331_p1 = scmp.ne.s32.totalorder %s5291_s9, %s4330_s8  ;;  %p4334_p2 = scmp.lt.u32.totalorder %s4330_s8, %s5291_s9 }
 0xdaa   :  { %p4336_p3 = pnand %p4334_p2, %p4331_p1 }
 0xdac   :  { %4339 = shalt.err (!%p4336_p3)
}
 0xdad   :  { %3492 = dma.vmem_to_hbm [thread:$0]  %s3490_s4, 32, %s5291_s9, [#allocation5]  }
 0xdae   :  { %4344 = dma.done.wait [#allocation5], 32  }
 0xdaf   :  { %4345 = vsyncadd [#allocation5], 4294967264 }
 0xdb0   :  { %3496 = vsyncpa [#allocation4], 1 }
 0xdb1   :  { %3497 = vsyncpa [#allocation7], 1 }
 0xdb2   :  { %3498 = vsyncpa [#allocation5], 1 }

</bundles_post_ra>
